<compile_context>
chip_gen: v5e
topology: v5e:2x2
jax: 0.10.0
libtpu: 0.0.40
codegen_flags: <defaults>
</compile_context>

<pallas_src>
import math
from functools import partial

import jax
import jax.numpy as jnp
from jax import lax
from jax.experimental import pallas as pl
from jax.experimental.pallas import tpu as pltpu

EPS = 1e-5                      # nn.BatchNorm2d default eps
LANE_TILE = 4096                # spatial (lane) tile for the projection matmuls
ATTN_COL_BUDGET = 24 << 20      # VMEM budget used to size the attention column tile
MAX_ATTN_TILE = 1024            # cap on the attention column tile


def _round_up(x, m):
    return ((x + m - 1) // m) * m


def _vmem_limit(footprint_bytes):
    # Per-kernel scoped-VMEM cap: 2x the block/temp footprint + 2 MiB headroom,
    # clamped to [8 MiB, 52 MiB] (safe on v5e/v6e 128 MiB and v7x 64 MiB).
    return int(min(max(2 * footprint_bytes + (2 << 20), 8 << 20), 52 << 20))


# --------------------------------------------------------------------------
# Pallas kernels
# --------------------------------------------------------------------------
def _proj_kernel(x_ref, *refs, n_out):
    # Channels-first fused 1x1-conv(+BN): for each (W, b): out = W @ x_tile + b.
    # x_ref: (1, Cin, TM); refs = (w_0, b_0, ..., w_{n-1}, b_{n-1}, o_0, ...).
    x = x_ref[0]                                          # (Cin, TM) bf16
    for j in range(n_out):
        w = refs[2 * j][...]                              # (Cout_j, Cin) bf16
        b = refs[2 * j + 1][...]                          # (Cout_j, 1)   f32
        o = refs[2 * n_out + j]
        acc = jnp.dot(w, x, preferred_element_type=jnp.float32)
        o[0] = (acc + b).astype(o.dtype)


def _attn_kernel(fx_ref, fy_ref, fs_ref, b_ref, xr_ref, o_ref):
    # All operands channels-first (lane dim = spatial).
    fx = fx_ref[0]                                        # (mid, TN) bf16  queries
    fy = fy_ref[0]                                        # (mid, M)  bf16  keys
    fs = fs_ref[0]                                        # (xin, M)  bf16  f_up-folded values
    # sim(n, m) = sum_c fx[c, n] * fy[c, m]  (contract the channel dim)
    sim = lax.dot_general(fx, fy, (((0,), (0,)), ((), ())),
                          preferred_element_type=jnp.float32)      # (TN, M) f32
    sim = sim - jnp.max(sim, axis=-1, keepdims=True)
    # bf16 exp (v6e/v7x EUP is bf16-capable); row-sum kept in f32.
    e = jnp.exp(sim.astype(jnp.bfloat16))
    denom = jnp.sum(e.astype(jnp.float32), axis=-1, keepdims=True)
    p = (e * pl.reciprocal(denom, approx=True)).astype(jnp.bfloat16)  # (TN, M)
    # outT(c, n) = sum_m fs[c, m] * p[n, m]   (trans-rhs matmul)
    outT = lax.dot_general(fs, p, (((1,), (1,)), ((), ())),
                           preferred_element_type=jnp.float32)     # (xin, TN)
    o_ref[0] = (outT + b_ref[...] + xr_ref[0]).astype(o_ref.dtype)


# --------------------------------------------------------------------------
# Kernel wrappers
# --------------------------------------------------------------------------
def fused_projections(x3, weight_bias_pairs, *, out_dtype=jnp.bfloat16,
                      tile=LANE_TILE):
    """Channels-first 1x1 convolutions sharing one read of the input.

    x3: (B, Cin, S); weight_bias_pairs: [(w_j (Cout_j, Cin), b_j (Cout_j,))].
    Returns [ (B, Cout_j, S) ] with out_j = w_j @ x + b_j (per batch).
    """
    B, Cin, S = x3.shape
    Sp = _round_up(S, 128)
    TM = Sp if Sp <= tile else tile
    Sp = _round_up(Sp, TM)

    xb = x3.astype(jnp.bfloat16)
    if Sp != S:
        xb = jnp.pad(xb, ((0, 0), (0, 0), (0, Sp - S)))

    operands = [xb]
    in_specs = [pl.BlockSpec((1, Cin, TM), lambda b, i: (b, 0, i))]
    out_shapes, out_specs = [], []
    footprint = 2 * Cin * TM * 2
    for w, bias in weight_bias_pairs:
        Cout = w.shape[0]
        operands += [w.astype(jnp.bfloat16),
                     bias.reshape(Cout, 1).astype(jnp.float32)]
        in_specs += [pl.BlockSpec((Cout, Cin), lambda b, i: (0, 0)),
                     pl.BlockSpec((Cout, 1), lambda b, i: (0, 0))]
        out_shapes.append(jax.ShapeDtypeStruct((B, Cout, Sp), out_dtype))
        out_specs.append(pl.BlockSpec((1, Cout, TM), lambda b, i: (b, 0, i)))
        footprint += 2 * Cout * Cin * 2 + 2 * Cout * TM * 2 + Cout * TM * 4

    outs = pl.pallas_call(
        partial(_proj_kernel, n_out=len(weight_bias_pairs)),
        out_shape=tuple(out_shapes),
        grid=(B, Sp // TM),
        in_specs=in_specs,
        out_specs=tuple(out_specs),
        compiler_params=pltpu.CompilerParams(
            dimension_semantics=("parallel", "parallel"),
            vmem_limit_bytes=_vmem_limit(footprint)),
    )(*operands)

    if Sp != S:
        return [o[:, :, :S] for o in outs]
    return list(outs)


def bca_attention(fx, fy, fs, b_up, x_res, *, out_dtype=jnp.float32):
    """out[c, n] = sum_m softmax_m(fx^T fy)[n, m] * fs[c, m] + b_up[c] + x_res[c, n].

    fx: (B, mid, N) queries; fy: (B, mid, M) keys; fs: (B, xin, M) values
    (already multiplied by the folded f_up weight); x_res: (B, xin, N) residual.
    Keys/values stay fully resident per batch; the query axis is tiled.
    """
    B, mid, N = fx.shape
    xin, M = fs.shape[1], fs.shape[2]

    # Column (query) tile sized against a VMEM budget: resident keys/values are
    # fixed cost, the (TN, M) softmax temporaries scale with TN.
    np128 = _round_up(N, 128)
    fixed = 2 * (mid + xin) * M * 2                   # fy + fs, double-buffered bf16
    per_col = 2 * mid * 2 + 4 * xin * 4 + 12 * M      # fx, x_res+out, sim/e/p temps
    avail = max(ATTN_COL_BUDGET - fixed, per_col * 128)
    TN = max(128, (avail // per_col) // 128 * 128)
    TN = min(TN, MAX_ATTN_TILE, np128)
    Np = _round_up(N, TN)
    # TODO(synk): for very large key counts the resident keys/values alone can
    # exceed v7x's 64 MiB VMEM; an online (2-pass) softmax tiled over M would
    # be needed there.

    if Np != N:
        fx = jnp.pad(fx, ((0, 0), (0, 0), (0, Np - N)))
        x_res = jnp.pad(x_res, ((0, 0), (0, 0), (0, Np - N)))

    b2 = b_up.reshape(xin, 1).astype(jnp.float32)
    footprint = fixed + per_col * TN

    out = pl.pallas_call(
        _attn_kernel,
        out_shape=jax.ShapeDtypeStruct((B, xin, Np), out_dtype),
        grid=(B, Np // TN),
        in_specs=[
            pl.BlockSpec((1, mid, TN), lambda b, i: (b, 0, i)),
            pl.BlockSpec((1, mid, M), lambda b, i: (b, 0, 0)),
            pl.BlockSpec((1, xin, M), lambda b, i: (b, 0, 0)),
            pl.BlockSpec((xin, 1), lambda b, i: (0, 0)),
            pl.BlockSpec((1, xin, TN), lambda b, i: (b, 0, i)),
        ],
        out_specs=pl.BlockSpec((1, xin, TN), lambda b, i: (b, 0, i)),
        compiler_params=pltpu.CompilerParams(
            dimension_semantics=("parallel", "parallel"),
            vmem_limit_bytes=_vmem_limit(footprint)),
    )(fx.astype(jnp.bfloat16), fy.astype(jnp.bfloat16),
      fs.astype(jnp.bfloat16), b2, x_res.astype(jnp.float32))

    return out if Np == N else out[:, :, :N]


# --------------------------------------------------------------------------
# Eval-mode BatchNorm folding (host-side / trace-time, static shapes only)
# --------------------------------------------------------------------------
def _fold_bn(bn):
    s = bn['gamma'] * lax.rsqrt(bn['var'] + EPS)
    b = bn['beta'] - bn['mean'] * s
    return s, b


def _fuse_conv_bn_x2(seq):
    """Conv1x1 -> BN -> Conv1x1 -> BN  ==>  one (Cout, Cin) weight + bias."""
    s1, b1 = _fold_bn(seq['bn1'])
    s2, b2 = _fold_bn(seq['bn2'])
    w1 = seq['w1'] * s1[:, None]
    w2 = seq['w2'] * s2[:, None]
    return w2 @ w1, w2 @ b1 + b2


# --------------------------------------------------------------------------
# BCA forward (matches the PyTorch module in eval mode)
# --------------------------------------------------------------------------
def bca_forward(params, x, y, *, scale=False):
    B, xin, H, W = x.shape
    By, yin, Hy, Wy = y.shape
    mid = params['f_x']['w1'].shape[0]            # static (from array shape)
    N, M = H * W, Hy * Wy
    assert B == By and N == M, "torch.matmul(sim, fself) requires H*W == Hy*Wy"

    # Fold the Conv+BN sequences.
    w_self, b_self = _fuse_conv_bn_x2(params['f_self'])
    w_x, b_x = _fuse_conv_bn_x2(params['f_x'])
    w_y, b_y = _fuse_conv_bn_x2(params['f_y'])
    s_up, b_up = _fold_bn(params['f_up']['bn'])
    w_up = params['f_up']['w'] * s_up[:, None]    # zero at faithful init

    # Fold f_up into the value projection (linear, commutes with the softmax
    # average since each probability row sums to 1); b_up added in the epilogue.
    w_sv = w_up @ w_self                          # (xin, xin)
    b_sv = w_up @ b_self                          # (xin,)
    if scale:                                     # fold mid**-0.5 into f_x (f32)
        sc = float(mid) ** -0.5
        w_x = w_x * sc
        b_x = b_x * sc

    # Channels-first, batch-leading activations (free reshapes, no transposes).
    x3 = x.reshape(B, xin, N)
    y3 = y.reshape(B, yin, M)

    # One projection kernel reads x once -> f_up-folded values and queries;
    # a second produces the keys from y.
    fs_up, fx = fused_projections(x3, [(w_sv, b_sv), (w_x, b_x)])
    fy = fused_projections(y3, [(w_y, b_y)])[0]

    # Attention + b_up + residual, fully fused; output is already NCHW-flat.
    out3 = bca_attention(fx, fy, fs_up, b_up, x3.astype(jnp.float32))
    return out3.reshape(B, xin, H, W)


# --------------------------------------------------------------------------
# Parameter init (mirrors the PyTorch module; conv weights stored as (Cout,Cin))
# --------------------------------------------------------------------------
def init_bca_params(key, xin, yin, mid, *, zero_up_bn=True, random_bn=False):
    keys = iter(jax.random.split(key, 32))

    def conv_w(cout, cin):
        std = 1.0 / math.sqrt(cin)
        return jax.random.normal(next(keys), (cout, cin), jnp.float32) * std

    def bn(c):
        if random_bn:
            k1, k2, k3, k4 = jax.random.split(next(keys), 4)
            return dict(gamma=1.0 + 0.1 * jax.random.normal(k1, (c,), jnp.float32),
                        beta=0.1 * jax.random.normal(k2, (c,), jnp.float32),
                        mean=0.1 * jax.random.normal(k3, (c,), jnp.float32),
                        var=jnp.abs(1.0 + 0.1 * jax.random.normal(k4, (c,), jnp.float32)))
        return dict(gamma=jnp.ones((c,), jnp.float32), beta=jnp.zeros((c,), jnp.float32),
                    mean=jnp.zeros((c,), jnp.float32), var=jnp.ones((c,), jnp.float32))

    def seq(cin):
        return dict(w1=conv_w(mid, cin), bn1=bn(mid), w2=conv_w(mid, mid), bn2=bn(mid))

    up_bn = bn(xin)
    if zero_up_bn:      # nn.init.constant_(f_up[1].weight/bias, 0)
        up_bn = dict(up_bn, gamma=jnp.zeros((xin,), jnp.float32),
                     beta=jnp.zeros((xin,), jnp.float32))
    return dict(f_self=seq(xin), f_x=seq(xin), f_y=seq(yin),
                f_up=dict(w=conv_w(xin, mid), bn=up_bn))


# --------------------------------------------------------------------------
# Pure-JAX f32 reference (faithful, unfused; validation only)
# --------------------------------------------------------------------------
def bca_reference(params, x, y, *, scale=False):
    def bn_apply(bn, t):
        s = bn['gamma'] / jnp.sqrt(bn['var'] + EPS)
        b = bn['beta'] - bn['mean'] * s
        return t * s[None, :, None, None] + b[None, :, None, None]

    def conv1x1(w, t):
        return jnp.einsum('oc,bchw->bohw', w, t)

    def seq(p, t):
        t = bn_apply(p['bn1'], conv1x1(p['w1'], t))
        return bn_apply(p['bn2'], conv1x1(p['w2'], t))

    B, xin, H, W = x.shape
    mid = params['f_x']['w1'].shape[0]
    fself = seq(params['f_self'], x).reshape(B, mid, -1).transpose(0, 2, 1)
    fx = seq(params['f_x'], x).reshape(B, mid, -1).transpose(0, 2, 1)
    fy = seq(params['f_y'], y).reshape(B, mid, -1)
    sim = jnp.einsum('bnc,bcm->bnm', fx, fy)
    if scale:
        sim = sim * (mid ** -0.5)
    p = jax.nn.softmax(sim, axis=-1)
    fout = jnp.einsum('bnm,bmc->bnc', p, fself).transpose(0, 2, 1).reshape(B, mid, H, W)
    up = bn_apply(params['f_up']['bn'], conv1x1(params['f_up']['w'], fout))
    return x + up


# --------------------------------------------------------------------------
if __name__ == "__main__":
    key = jax.random.PRNGKey(0)
    kp, kp2, kx, ky = jax.random.split(key, 4)

    B, xin, yin, mid, H, W = 2, 32, 64, 32, 16, 16
    x = jax.random.normal(kx, (B, xin, H, W), jnp.float32)
    y = jax.random.normal(ky, (B, yin, H, W), jnp.float32)

    # 1) Faithful init: f_up's BatchNorm weight/bias are zero-initialised, so
    #    the module output must equal x exactly (tests layouts + residual).
    fwd = jax.jit(partial(bca_forward, scale=False))
    params = init_bca_params(kp, xin, yin, mid)
    out = fwd(params, x, y)
    jax.block_until_ready(out)
    assert out.shape == x.shape
    assert bool(jnp.all(jnp.isfinite(out)))
    assert bool(jnp.max(jnp.abs(out - x)) < 1e-5), "zero-init f_up BN must give out == x"

    # 2) Non-trivial BN statistics + softmax scaling: compare against the
    #    unfused f32 reference (loose tolerance: bf16 MXU operands, bf16 exp,
    #    approx reciprocal; accumulation in f32).
    fwd_s = jax.jit(partial(bca_forward, scale=True))
    params2 = init_bca_params(kp2, xin, yin, mid, zero_up_bn=False, random_bn=True)
    out2 = fwd_s(params2, x, y)
    ref2 = bca_reference(params2, x, y, scale=True)
    jax.block_until_ready((out2, ref2))
    assert bool(jnp.all(jnp.isfinite(out2)))
    rel = float(jnp.linalg.norm(out2 - ref2) / (jnp.linalg.norm(ref2) + 1e-12))
    assert rel < 0.1, f"relative error too large: {rel}"

    # TODO(synk): training-mode BatchNorm (batch-statistics update) is not
    # implemented; BN is folded in eval mode as in the PyTorch module's usage.
    print("KERNEL_OK")
</pallas_src>

<mosaic_0001>
module attributes {stable_mosaic.version = 11 : i64} {
  func.func @_attn_kernel(%arg0: i32, %arg1: i32, %arg2: memref<1x32x256xbf16, #tpu.memory_space<vmem>>, %arg3: memref<1x32x256xbf16, #tpu.memory_space<vmem>>, %arg4: memref<1x32x256xbf16, #tpu.memory_space<vmem>>, %arg5: memref<32x1xf32, #tpu.memory_space<vmem>>, %arg6: memref<1x32x256xf32, #tpu.memory_space<vmem>>, %arg7: memref<1x32x256xf32, #tpu.memory_space<vmem>>) attributes {dimension_semantics = [#tpu.dimension_semantics<parallel>, #tpu.dimension_semantics<parallel>], iteration_bounds = array<i64: 2, 1>, scalar_prefetch = 0 : i64, scratch_operands = 0 : i64, tpu.core_type = #tpu.core_type<tc>, window_params = [{transform_indices = @transform_0, window_bounds = array<i64: 1, 32, 256>}, {transform_indices = @transform_1, window_bounds = array<i64: 1, 32, 256>}, {transform_indices = @transform_2, window_bounds = array<i64: 1, 32, 256>}, {pipeline_mode = #tpu.pipeline_mode<synchronous>, transform_indices = @transform_3, window_bounds = array<i64: 32, 1>}, {transform_indices = @transform_4, window_bounds = array<i64: 1, 32, 256>}, {transform_indices = @transform_5, window_bounds = array<i64: 1, 32, 256>}]} {
    %c0 = arith.constant 0 : index
    %c0_0 = arith.constant 0 : index
    %c0_1 = arith.constant 0 : index
    %0 = vector.load %arg2[%c0, %c0_0, %c0_1] : memref<1x32x256xbf16, #tpu.memory_space<vmem>>, vector<1x32x256xbf16>
    %1 = vector.shape_cast %0 : vector<1x32x256xbf16> to vector<32x256xbf16>
    %c0_2 = arith.constant 0 : index
    %c0_3 = arith.constant 0 : index
    %c0_4 = arith.constant 0 : index
    %2 = vector.load %arg3[%c0_2, %c0_3, %c0_4] : memref<1x32x256xbf16, #tpu.memory_space<vmem>>, vector<1x32x256xbf16>
    %3 = vector.shape_cast %2 : vector<1x32x256xbf16> to vector<32x256xbf16>
    %c0_5 = arith.constant 0 : index
    %c0_6 = arith.constant 0 : index
    %c0_7 = arith.constant 0 : index
    %4 = vector.load %arg4[%c0_5, %c0_6, %c0_7] : memref<1x32x256xbf16, #tpu.memory_space<vmem>>, vector<1x32x256xbf16>
    %5 = vector.shape_cast %4 : vector<1x32x256xbf16> to vector<32x256xbf16>
    %cst = arith.constant dense<0.000000e+00> : vector<256x256xf32>
    %6 = tpu.matmul %1, %3, %cst {dimension_numbers = #tpu.dot_dimension_numbers<[0], [0], [1], [1], [0, 1, 1, 1], [], []>} : vector<32x256xbf16>, vector<32x256xbf16>, vector<256x256xf32> -> vector<256x256xf32>
    %cst_8 = arith.constant dense<0xFF800000> : vector<256xf32>
    %7 = vector.multi_reduction <maximumf>, %6, %cst_8 [1] : vector<256x256xf32> to vector<256xf32>
    %8 = vector.shape_cast %7 : vector<256xf32> to vector<256x1xf32>
    %9 = vector.broadcast %8 : vector<256x1xf32> to vector<256x256xf32>
    %10 = arith.subf %6, %9 : vector<256x256xf32>
    %11 = arith.truncf %10 : vector<256x256xf32> to vector<256x256xbf16>
    %12 = math.exp %11 : vector<256x256xbf16>
    %13 = arith.extf %12 : vector<256x256xbf16> to vector<256x256xf32>
    %cst_9 = arith.constant dense<0.000000e+00> : vector<256xf32>
    %14 = vector.multi_reduction <add>, %13, %cst_9 [1] : vector<256x256xf32> to vector<256xf32>
    %15 = vector.shape_cast %14 : vector<256xf32> to vector<256x1xf32>
    %16 = tpu.reciprocal %15 {approx = true} : vector<256x1xf32> -> vector<256x1xf32>
    %17 = arith.extf %12 : vector<256x256xbf16> to vector<256x256xf32>
    %18 = vector.broadcast %16 : vector<256x1xf32> to vector<256x256xf32>
    %19 = arith.mulf %17, %18 : vector<256x256xf32>
    %20 = arith.truncf %19 : vector<256x256xf32> to vector<256x256xbf16>
    %cst_10 = arith.constant dense<0.000000e+00> : vector<32x256xf32>
    %21 = tpu.matmul %5, %20, %cst_10 {dimension_numbers = #tpu.dot_dimension_numbers<[1], [1], [0], [0], [0, 0, 1, 0], [], []>} : vector<32x256xbf16>, vector<256x256xbf16>, vector<32x256xf32> -> vector<32x256xf32>
    %c0_11 = arith.constant 0 : index
    %c0_12 = arith.constant 0 : index
    %22 = vector.load %arg5[%c0_11, %c0_12] : memref<32x1xf32, #tpu.memory_space<vmem>>, vector<32x1xf32>
    %23 = vector.broadcast %22 : vector<32x1xf32> to vector<32x256xf32>
    %24 = arith.addf %21, %23 : vector<32x256xf32>
    %c0_13 = arith.constant 0 : index
    %c0_14 = arith.constant 0 : index
    %c0_15 = arith.constant 0 : index
    %25 = vector.load %arg6[%c0_13, %c0_14, %c0_15] : memref<1x32x256xf32, #tpu.memory_space<vmem>>, vector<1x32x256xf32>
    %26 = vector.shape_cast %25 : vector<1x32x256xf32> to vector<32x256xf32>
    %27 = arith.addf %24, %26 : vector<32x256xf32>
    %c0_16 = arith.constant 0 : index
    %c0_17 = arith.constant 0 : index
    %c0_18 = arith.constant 0 : index
    %28 = vector.load %arg7[%c0_16, %c0_17, %c0_18] : memref<1x32x256xf32, #tpu.memory_space<vmem>>, vector<1x32x256xf32>
    %29 = vector.shape_cast %28 : vector<1x32x256xf32> to vector<32x256xf32>
    %30 = vector.shape_cast %27 : vector<32x256xf32> to vector<1x32x256xf32>
    tpu.vector_store %arg7[%c0_16, %c0_17, %c0_18], %30 {strides = array<i32>} : memref<1x32x256xf32, #tpu.memory_space<vmem>>, vector<1x32x256xf32>,
    return
  }
  func.func @transform_0(%arg0: i32, %arg1: i32) -> (i32, i32, i32) {
    %c0_i32 = arith.constant 0 : i32
    %c0_i32_0 = arith.constant 0 : i32
    return %arg0, %c0_i32, %arg1 : i32, i32, i32
  }
  func.func @transform_1(%arg0: i32, %arg1: i32) -> (i32, i32, i32) {
    %c0_i32 = arith.constant 0 : i32
    %c0_i32_0 = arith.constant 0 : i32
    %c0_i32_1 = arith.constant 0 : i32
    return %arg0, %c0_i32, %c0_i32_0 : i32, i32, i32
  }
  func.func @transform_2(%arg0: i32, %arg1: i32) -> (i32, i32, i32) {
    %c0_i32 = arith.constant 0 : i32
    %c0_i32_0 = arith.constant 0 : i32
    %c0_i32_1 = arith.constant 0 : i32
    return %arg0, %c0_i32, %c0_i32_0 : i32, i32, i32
  }
  func.func @transform_3(%arg0: i32, %arg1: i32) -> (i32, i32) {
    %c0_i32 = arith.constant 0 : i32
    %c0_i32_0 = arith.constant 0 : i32
    %c0_i32_1 = arith.constant 0 : i32
    return %c0_i32, %c0_i32_0 : i32, i32
  }
  func.func @transform_4(%arg0: i32, %arg1: i32) -> (i32, i32, i32) {
    %c0_i32 = arith.constant 0 : i32
    %c0_i32_0 = arith.constant 0 : i32
    return %arg0, %c0_i32, %arg1 : i32, i32, i32
  }
  func.func @transform_5(%arg0: i32, %arg1: i32) -> (i32, i32, i32) {
    %c0_i32 = arith.constant 0 : i32
    %c0_i32_0 = arith.constant 0 : i32
    return %arg0, %c0_i32, %arg1 : i32, i32, i32
  }
}

module attributes {stable_mosaic.version = 11 : i64} {
  func.func @_proj_kernel(%arg0: i32, %arg1: i32, %arg2: memref<1x32x256xbf16, #tpu.memory_space<vmem>>, %arg3: memref<32x32xbf16, #tpu.memory_space<vmem>>, %arg4: memref<32x1xf32, #tpu.memory_space<vmem>>, %arg5: memref<32x32xbf16, #tpu.memory_space<vmem>>, %arg6: memref<32x1xf32, #tpu.memory_space<vmem>>, %arg7: memref<1x32x256xbf16, #tpu.memory_space<vmem>>, %arg8: memref<1x32x256xbf16, #tpu.memory_space<vmem>>) attributes {dimension_semantics = [#tpu.dimension_semantics<parallel>, #tpu.dimension_semantics<parallel>], iteration_bounds = array<i64: 2, 1>, scalar_prefetch = 0 : i64, scratch_operands = 0 : i64, tpu.core_type = #tpu.core_type<tc>, window_params = [{transform_indices = @transform_0, window_bounds = array<i64: 1, 32, 256>}, {pipeline_mode = #tpu.pipeline_mode<synchronous>, transform_indices = @transform_1, window_bounds = array<i64: 32, 32>}, {pipeline_mode = #tpu.pipeline_mode<synchronous>, transform_indices = @transform_2, window_bounds = array<i64: 32, 1>}, {pipeline_mode = #tpu.pipeline_mode<synchronous>, transform_indices = @transform_3, window_bounds = array<i64: 32, 32>}, {pipeline_mode = #tpu.pipeline_mode<synchronous>, transform_indices = @transform_4, window_bounds = array<i64: 32, 1>}, {transform_indices = @transform_5, window_bounds = array<i64: 1, 32, 256>}, {transform_indices = @transform_6, window_bounds = array<i64: 1, 32, 256>}]} {
    %c0 = arith.constant 0 : index
    %c0_0 = arith.constant 0 : index
    %c0_1 = arith.constant 0 : index
    %0 = vector.load %arg2[%c0, %c0_0, %c0_1] : memref<1x32x256xbf16, #tpu.memory_space<vmem>>, vector<1x32x256xbf16>
    %1 = vector.shape_cast %0 : vector<1x32x256xbf16> to vector<32x256xbf16>
    %c0_2 = arith.constant 0 : index
    %c0_3 = arith.constant 0 : index
    %2 = vector.load %arg3[%c0_2, %c0_3] : memref<32x32xbf16, #tpu.memory_space<vmem>>, vector<32x32xbf16>
    %c0_4 = arith.constant 0 : index
    %c0_5 = arith.constant 0 : index
    %3 = vector.load %arg4[%c0_4, %c0_5] : memref<32x1xf32, #tpu.memory_space<vmem>>, vector<32x1xf32>
    %cst = arith.constant dense<0.000000e+00> : vector<32x256xf32>
    %4 = tpu.matmul %2, %1, %cst {dimension_numbers = #tpu.dot_dimension_numbers<[1], [0], [0], [1], [0, 0, 1, 1], [], []>} : vector<32x32xbf16>, vector<32x256xbf16>, vector<32x256xf32> -> vector<32x256xf32>
    %5 = vector.broadcast %3 : vector<32x1xf32> to vector<32x256xf32>
    %6 = arith.addf %4, %5 : vector<32x256xf32>
    %7 = arith.truncf %6 : vector<32x256xf32> to vector<32x256xbf16>
    %c0_6 = arith.constant 0 : index
    %c0_7 = arith.constant 0 : index
    %c0_8 = arith.constant 0 : index
    %8 = vector.load %arg7[%c0_6, %c0_7, %c0_8] : memref<1x32x256xbf16, #tpu.memory_space<vmem>>, vector<1x32x256xbf16>
    %9 = vector.shape_cast %8 : vector<1x32x256xbf16> to vector<32x256xbf16>
    %10 = vector.shape_cast %7 : vector<32x256xbf16> to vector<1x32x256xbf16>
    tpu.vector_store %arg7[%c0_6, %c0_7, %c0_8], %10 {strides = array<i32>} : memref<1x32x256xbf16, #tpu.memory_space<vmem>>, vector<1x32x256xbf16>,
    %c0_9 = arith.constant 0 : index
    %c0_10 = arith.constant 0 : index
    %11 = vector.load %arg5[%c0_9, %c0_10] : memref<32x32xbf16, #tpu.memory_space<vmem>>, vector<32x32xbf16>
    %c0_11 = arith.constant 0 : index
    %c0_12 = arith.constant 0 : index
    %12 = vector.load %arg6[%c0_11, %c0_12] : memref<32x1xf32, #tpu.memory_space<vmem>>, vector<32x1xf32>
    %cst_13 = arith.constant dense<0.000000e+00> : vector<32x256xf32>
    %13 = tpu.matmul %11, %1, %cst_13 {dimension_numbers = #tpu.dot_dimension_numbers<[1], [0], [0], [1], [0, 0, 1, 1], [], []>} : vector<32x32xbf16>, vector<32x256xbf16>, vector<32x256xf32> -> vector<32x256xf32>
    %14 = vector.broadcast %12 : vector<32x1xf32> to vector<32x256xf32>
    %15 = arith.addf %13, %14 : vector<32x256xf32>
    %16 = arith.truncf %15 : vector<32x256xf32> to vector<32x256xbf16>
    %c0_14 = arith.constant 0 : index
    %c0_15 = arith.constant 0 : index
    %c0_16 = arith.constant 0 : index
    %17 = vector.load %arg8[%c0_14, %c0_15, %c0_16] : memref<1x32x256xbf16, #tpu.memory_space<vmem>>, vector<1x32x256xbf16>
    %18 = vector.shape_cast %17 : vector<1x32x256xbf16> to vector<32x256xbf16>
    %19 = vector.shape_cast %16 : vector<32x256xbf16> to vector<1x32x256xbf16>
    tpu.vector_store %arg8[%c0_14, %c0_15, %c0_16], %19 {strides = array<i32>} : memref<1x32x256xbf16, #tpu.memory_space<vmem>>, vector<1x32x256xbf16>,
    return
  }
  func.func @transform_0(%arg0: i32, %arg1: i32) -> (i32, i32, i32) {
    %c0_i32 = arith.constant 0 : i32
    %c0_i32_0 = arith.constant 0 : i32
    return %arg0, %c0_i32, %arg1 : i32, i32, i32
  }
  func.func @transform_1(%arg0: i32, %arg1: i32) -> (i32, i32) {
    %c0_i32 = arith.constant 0 : i32
    %c0_i32_0 = arith.constant 0 : i32
    %c0_i32_1 = arith.constant 0 : i32
    return %c0_i32, %c0_i32_0 : i32, i32
  }
  func.func @transform_2(%arg0: i32, %arg1: i32) -> (i32, i32) {
    %c0_i32 = arith.constant 0 : i32
    %c0_i32_0 = arith.constant 0 : i32
    %c0_i32_1 = arith.constant 0 : i32
    return %c0_i32, %c0_i32_0 : i32, i32
  }
  func.func @transform_3(%arg0: i32, %arg1: i32) -> (i32, i32) {
    %c0_i32 = arith.constant 0 : i32
    %c0_i32_0 = arith.constant 0 : i32
    %c0_i32_1 = arith.constant 0 : i32
    return %c0_i32, %c0_i32_0 : i32, i32
  }
  func.func @transform_4(%arg0: i32, %arg1: i32) -> (i32, i32) {
    %c0_i32 = arith.constant 0 : i32
    %c0_i32_0 = arith.constant 0 : i32
    %c0_i32_1 = arith.constant 0 : i32
    return %c0_i32, %c0_i32_0 : i32, i32
  }
  func.func @transform_5(%arg0: i32, %arg1: i32) -> (i32, i32, i32) {
    %c0_i32 = arith.constant 0 : i32
    %c0_i32_0 = arith.constant 0 : i32
    return %arg0, %c0_i32, %arg1 : i32, i32, i32
  }
  func.func @transform_6(%arg0: i32, %arg1: i32) -> (i32, i32, i32) {
    %c0_i32 = arith.constant 0 : i32
    %c0_i32_0 = arith.constant 0 : i32
    return %arg0, %c0_i32, %arg1 : i32, i32, i32
  }
}

module attributes {stable_mosaic.version = 11 : i64} {
  func.func @_proj_kernel(%arg0: i32, %arg1: i32, %arg2: memref<1x64x256xbf16, #tpu.memory_space<vmem>>, %arg3: memref<32x64xbf16, #tpu.memory_space<vmem>>, %arg4: memref<32x1xf32, #tpu.memory_space<vmem>>, %arg5: memref<1x32x256xbf16, #tpu.memory_space<vmem>>) attributes {dimension_semantics = [#tpu.dimension_semantics<parallel>, #tpu.dimension_semantics<parallel>], iteration_bounds = array<i64: 2, 1>, scalar_prefetch = 0 : i64, scratch_operands = 0 : i64, tpu.core_type = #tpu.core_type<tc>, window_params = [{transform_indices = @transform_0, window_bounds = array<i64: 1, 64, 256>}, {pipeline_mode = #tpu.pipeline_mode<synchronous>, transform_indices = @transform_1, window_bounds = array<i64: 32, 64>}, {pipeline_mode = #tpu.pipeline_mode<synchronous>, transform_indices = @transform_2, window_bounds = array<i64: 32, 1>}, {transform_indices = @transform_3, window_bounds = array<i64: 1, 32, 256>}]} {
    %c0 = arith.constant 0 : index
    %c0_0 = arith.constant 0 : index
    %c0_1 = arith.constant 0 : index
    %0 = vector.load %arg2[%c0, %c0_0, %c0_1] : memref<1x64x256xbf16, #tpu.memory_space<vmem>>, vector<1x64x256xbf16>
    %1 = vector.shape_cast %0 : vector<1x64x256xbf16> to vector<64x256xbf16>
    %c0_2 = arith.constant 0 : index
    %c0_3 = arith.constant 0 : index
    %2 = vector.load %arg3[%c0_2, %c0_3] : memref<32x64xbf16, #tpu.memory_space<vmem>>, vector<32x64xbf16>
    %c0_4 = arith.constant 0 : index
    %c0_5 = arith.constant 0 : index
    %3 = vector.load %arg4[%c0_4, %c0_5] : memref<32x1xf32, #tpu.memory_space<vmem>>, vector<32x1xf32>
    %cst = arith.constant dense<0.000000e+00> : vector<32x256xf32>
    %4 = tpu.matmul %2, %1, %cst {dimension_numbers = #tpu.dot_dimension_numbers<[1], [0], [0], [1], [0, 0, 1, 1], [], []>} : vector<32x64xbf16>, vector<64x256xbf16>, vector<32x256xf32> -> vector<32x256xf32>
    %5 = vector.broadcast %3 : vector<32x1xf32> to vector<32x256xf32>
    %6 = arith.addf %4, %5 : vector<32x256xf32>
    %7 = arith.truncf %6 : vector<32x256xf32> to vector<32x256xbf16>
    %c0_6 = arith.constant 0 : index
    %c0_7 = arith.constant 0 : index
    %c0_8 = arith.constant 0 : index
    %8 = vector.load %arg5[%c0_6, %c0_7, %c0_8] : memref<1x32x256xbf16, #tpu.memory_space<vmem>>, vector<1x32x256xbf16>
    %9 = vector.shape_cast %8 : vector<1x32x256xbf16> to vector<32x256xbf16>
    %10 = vector.shape_cast %7 : vector<32x256xbf16> to vector<1x32x256xbf16>
    tpu.vector_store %arg5[%c0_6, %c0_7, %c0_8], %10 {strides = array<i32>} : memref<1x32x256xbf16, #tpu.memory_space<vmem>>, vector<1x32x256xbf16>,
    return
  }
  func.func @transform_0(%arg0: i32, %arg1: i32) -> (i32, i32, i32) {
    %c0_i32 = arith.constant 0 : i32
    %c0_i32_0 = arith.constant 0 : i32
    return %arg0, %c0_i32, %arg1 : i32, i32, i32
  }
  func.func @transform_1(%arg0: i32, %arg1: i32) -> (i32, i32) {
    %c0_i32 = arith.constant 0 : i32
    %c0_i32_0 = arith.constant 0 : i32
    %c0_i32_1 = arith.constant 0 : i32
    return %c0_i32, %c0_i32_0 : i32, i32
  }
  func.func @transform_2(%arg0: i32, %arg1: i32) -> (i32, i32) {
    %c0_i32 = arith.constant 0 : i32
    %c0_i32_0 = arith.constant 0 : i32
    %c0_i32_1 = arith.constant 0 : i32
    return %c0_i32, %c0_i32_0 : i32, i32
  }
  func.func @transform_3(%arg0: i32, %arg1: i32) -> (i32, i32, i32) {
    %c0_i32 = arith.constant 0 : i32
    %c0_i32_0 = arith.constant 0 : i32
    return %arg0, %c0_i32, %arg1 : i32, i32, i32
  }
}

</mosaic_0001>

<bundles_post_ra>
// kernel: bca_forward.4
= control target key start
LH: loop header
LB: loop body
LE: loop exit
PB: predicated region body
PF: predicated region fallthrough
CT: control target
= control target key end

     0   :  { %s584_s12 = smov 0   ;;  %s586_s13 = smov 0   ;;  %s657_s0 = inlined_call_operand.vmem [shape: bf16[2,64,256], index: 0, kind: input, shape index: {}]   ;;  %s658_s1 = inlined_call_operand.vmem [shape: bf16[32,64], index: 1, kind: input, shape index: {}]   ;;  %s659_s2 = inlined_call_operand.vmem [shape: f32[32,1], index: 2, kind: input, shape index: {}]   ;;  %s660_s3 = inlined_call_operand.vmem [shape: bf16[2,32,256], index: 3, kind: output, shape index: {}]  }
   0x1   :  { %s588_s14 = smov 0  }
   0x2 LB: > { %s25_s15 = sadd.s32 1, %s557_s13  ;;  %p441_p0 = scmp.ge.s32.totalorder %s561_s14, 1  ;;  %s561_s14 = sphi %s588_s14, %s13_s14   ;;  %s557_s13 = sphi %s586_s13, %s662_s13   ;;  %s553_s12 = sphi %s584_s12, %s661_s12  }
   0x3   : > { %p27_p1 = scmp.ge.s32.totalorder %s25_s15, 2  ;;  %p158_p2 = scmp.lt.s32.totalorder %s561_s14, 3 }
   0x5   : > { %s664_s15 = smov (%p27_p1, %s25_s15), 0  ;;  %p159_p3 = pnand %p441_p0, %p158_p2 }
   0x6   : > { %p191_p4 = scmp.lt.s32.totalorder (!%p159_p3), %s553_s12, 1 }
   0x7   : > { %162 = sbr.rel (%p159_p3) target bundleno = 180 (0xb4), region = 32 }
   0xc   : > { %v225_v0 = vld [vmem:[%s659_s2 + $0x10] sm:$0xff]  ;;  %v563_v1 = vmov 0   ;;  %v223_v2 = vld [vmem:[%s659_s2] sm:$0xff]  ;;  %s666_s12 = smov (!%p191_p4, %s553_s12), 1  ;;  %v226_v6 = vld [vmem:[%s659_s2 + $0x18] sm:$0xff]  ;;  %vm297_vm0 = vcmask 523264  }
   0xd   : > { %538 = vset.pattern.permute.xlu1 %v563_v1  ;;  %537 = vset.pattern.permute.xlu0 %v563_v1  ;;  %s492_s20 = sshll.u32 %s666_s12, 6  ;;  %v224_v14 = vld [vmem:[%s659_s2 + $0x8] sm:$0xff]  ;;  %v502_v29 = vld [vmem:[%s658_s1] sm:$0xff]  ;;  %s493_s5 = sshll.u32 %s666_s12, 5 }
   0xe   : > { %239 = vperm.xlu1 %538, %v225_v0   ;;  %229 = vperm.xlu0 %537, %v223_v2   ;;  %s614_s23 = scalar_lea.vmem %s657_s0, %s492_s20  ;;  %v503_v30 = vld [vmem:[%s658_s1 + $0x8] sm:$0xff]  ;;  %s208_s8 = scalar_lea.vmem %s660_s3, %s493_s5 }
   0xf   : > { %v480_v3 = vld [vmem:[%s614_s23 + $0x30] sm:$0xf]  ;;  %v501_v4 = vld [vmem:[%s614_s23 + $0x34] sm:$0xf0]  ;;  %v500_v5 = vld [vmem:[%s614_s23 + $0x34] sm:$0xf] }
  0x10   : > { %v481_v7 = vor.u32 %v501_v4, %v480_v3  ;;  %v482_v8 = vld [vmem:[%s614_s23 + $0x38] sm:$0xf0]  ;;  %v472_v9 = vld [vmem:[%s614_s23 + $0x20] sm:$0xf]  ;;  %v499_v10 = vld [vmem:[%s614_s23 + $0x24] sm:$0xf0] }
  0x11   : > { %v485_v11 = vor.u32 %v500_v5, %v482_v8  ;;  %v498_v12 = vld [vmem:[%s614_s23 + $0x24] sm:$0xf]  ;;  %v474_v13 = vld [vmem:[%s614_s23 + $0x28] sm:$0xf0]  ;;  %v473_v15 = vor.u32 %v499_v10, %v472_v9  ;;  %v464_v17 = vld [vmem:[%s614_s23 + $0x10] sm:$0xf] }
  0x12   : > { %308 = vmatpush.bf16.msra.mxu0 %v481_v7  ;;  %504 = vmatpush.bf16.msra.mxu2 %v481_v7  ;;  %v477_v16 = vor.u32 %v498_v12, %v474_v13  ;;  %v497_v18 = vld [vmem:[%s614_s23 + $0x14] sm:$0xf0]  ;;  %v496_v19 = vld [vmem:[%s614_s23 + $0x14] sm:$0xf]  ;;  %v466_v20 = vld [vmem:[%s614_s23 + $0x18] sm:$0xf0] }
  0x13   : > { %327 = vmatpush.bf16.msra.mxu1 %v485_v11  ;;  %508 = vmatpush.bf16.msra.mxu3 %v485_v11  ;;  %v465_v21 = vor.u32 %v497_v18, %v464_v17  ;;  %v469_v22 = vor.u32 %v496_v19, %v466_v20  ;;  %v456_v23 = vld [vmem:[%s614_s23] sm:$0xf]  ;;  %v495_v24 = vld [vmem:[%s614_s23 + $0x4] sm:$0xf0]  ;;  %v494_v25 = vld [vmem:[%s614_s23 + $0x4] sm:$0xf] }
  0x14   : > { %v458_v26 = vld [vmem:[%s614_s23 + $0x8] sm:$0xf0]  ;;  %v457_v27 = vor.u32 %v495_v24, %v456_v23 }
  0x15   : > { %v461_v28 = vor.u32 %v494_v25, %v458_v26 }
  0x16   : > { %244 = vperm.xlu1 %538, %v226_v6   ;;  %234 = vperm.xlu0 %537, %v224_v14  }
  0x17   : > { %309 = vmatpush.bf16.msra.mxu0 %v473_v15  ;;  %505 = vmatpush.bf16.msra.mxu2 %v473_v15 }
  0x18   : > { %328 = vmatpush.bf16.msra.mxu1 %v477_v16  ;;  %509 = vmatpush.bf16.msra.mxu3 %v477_v16 }
  0x1b   : > { %310 = vmatpush.bf16.msra.mxu0 %v465_v21  ;;  %506 = vmatpush.bf16.msra.mxu2 %v465_v21 }
  0x1c   : > { %329 = vmatpush.bf16.msra.mxu1 %v469_v22  ;;  %510 = vmatpush.bf16.msra.mxu3 %v469_v22 }
  0x1f   : > { %311 = vmatpush.bf16.msra.mxu0 %v457_v27  ;;  %507 = vmatpush.bf16.msra.mxu2 %v457_v27 }
  0x20   : > { %330 = vmatpush.bf16.msra.mxu1 %v461_v28  ;;  %511 = vmatpush.bf16.msra.mxu3 %v461_v28 }
  0x22   : > { %486 = vmatmul.msk.bf16.vlgmr.msra.gmra.mxu0 %vm297_vm0, %v502_v29  ;;  %487 = vmatmul.msk.bf16.vlgmr.msra.gmra.mxu2 %vm297_vm0, %v503_v30 }
  0x23   : > { %488 = vmatmul.msk.bf16.vlgmr.msra.gmra.mxu1 %vm297_vm0, %v502_v29  ;;  %489 = vmatmul.msk.bf16.vlgmr.msra.gmra.mxu3 %vm297_vm0, %v503_v30 }
  0x80   : > { %v230_v31 = vpop.permute.xlu0 %229  ;;  %v240_v36 = vpop.permute.xlu1 %239 }
  0x88   : > { %v235_v41 = vpop.permute.xlu0 %234  ;;  %v245_v49 = vpop.permute.xlu1 %244 }
  0x9f   : > { %v313_v32 = vpop.f32.mrf.mxu0 }
  0xa0   : > { %v314_v33 = vadd.f32 %v313_v32, %v230_v31  ;;  %v332_v34 = vpop.f32.mrf.mxu1 }
  0xa1   : > { %v333_v35 = vadd.f32 %v332_v34, %v230_v31 }
  0xa3   : > { %v342_v37 = vpack.c.bf16 %v333_v35, %v314_v33 }
  0xa5   : > { %346 = vst [vmem:[%s208_s8] sm:$0xff] %v342_v37  ;;  %v318_v38 = vpop.f32.mrf.mxu2 }
  0xa6   : > { %v319_v39 = vadd.f32 %v318_v38, %v240_v36  ;;  %v337_v40 = vpop.f32.mrf.mxu3 }
  0xa7   : > { %v338_v42 = vadd.f32 %v337_v40, %v240_v36  ;;  %v315_v43 = vpop.f32.mrf.mxu0 }
  0xa8   : > { %v316_v44 = vadd.f32 %v315_v43, %v235_v41  ;;  %v334_v45 = vpop.f32.mrf.mxu1 }
  0xa9   : > { %v344_v46 = vpack.c.bf16 %v338_v42, %v319_v39  ;;  %v335_v47 = vadd.f32 %v334_v45, %v235_v41 }
  0xab   : > { %348 = vst [vmem:[%s208_s8 + $0x10] sm:$0xff] %v344_v46  ;;  %v343_v48 = vpack.c.bf16 %v335_v47, %v316_v44 }
  0xad   : > { %347 = vst [vmem:[%s208_s8 + $0x8] sm:$0xff] %v343_v48  ;;  %v320_v50 = vpop.f32.mrf.mxu2 }
  0xae   : > { %v321_v51 = vadd.f32 %v320_v50, %v245_v49  ;;  %v339_v52 = vpop.f32.mrf.mxu3 }
  0xaf   : > { %v340_v53 = vadd.f32 %v339_v52, %v245_v49 }
  0xb1   : > { %v345_v54 = vpack.c.bf16 %v340_v53, %v321_v51 }
  0xb3   : > { %349 = vst [vmem:[%s208_s8 + $0x18] sm:$0xff] %v345_v54 }
  0xb4 PF: > { %s13_s14 = sadd.s32 1, %s561_s14   ;;  %s661_s12 = smov %s557_s13 }
  0xb5   : > { %p10_p5 = scmp.ge.s32.totalorder %s13_s14, 4   ;;  %s662_s13 = smov %s664_s15 }
  0xb7   :  { %12 = sbr.rel (!%p10_p5) target bundleno = 2 (0x2), region = 62 }

// kernel: bca_forward.3
= control target key start
LH: loop header
LB: loop body
LE: loop exit
PB: predicated region body
PF: predicated region fallthrough
CT: control target
= control target key end

     0   :  { %s810_s21 = smov 0   ;;  %s812_s22 = smov 0   ;;  %s907_s0 = inlined_call_operand.vmem [shape: bf16[2,32,256], index: 0, kind: input, shape index: {}]   ;;  %s908_s1 = inlined_call_operand.vmem [shape: bf16[32,32], index: 1, kind: input, shape index: {}]   ;;  %s909_s2 = inlined_call_operand.vmem [shape: f32[32,1], index: 2, kind: input, shape index: {}]   ;;  %s910_s3 = inlined_call_operand.vmem [shape: bf16[32,32], index: 3, kind: input, shape index: {}]   ;;  %s911_s4 = inlined_call_operand.vmem [shape: f32[32,1], index: 4, kind: input, shape index: {}]   ;;  %s912_s5 = inlined_call_operand.vmem [shape: bf16[2,32,256], index: 5, kind: output, shape index: {0}]   ;;  %s913_s6 = inlined_call_operand.vmem [shape: bf16[2,32,256], index: 6, kind: output, shape index: {1}]  }
   0x1   :  { %s814_s23 = smov 0  }
   0x2 LB: > { %s29_s24 = sadd.s32 1, %s768_s22  ;;  %p662_p0 = scmp.ge.s32.totalorder %s772_s23, 1  ;;  %s772_s23 = sphi %s814_s23, %s17_s23   ;;  %s768_s22 = sphi %s812_s22, %s915_s22   ;;  %s764_s21 = sphi %s810_s21, %s914_s21  }
   0x3   : > { %p31_p1 = scmp.ge.s32.totalorder %s29_s24, 2  ;;  %p238_p2 = scmp.lt.s32.totalorder %s772_s23, 3 }
   0x5   : > { %s917_s24 = smov (%p31_p1, %s29_s24), 0  ;;  %p239_p3 = pnand %p662_p0, %p238_p2 }
   0x6   : > { %p286_p4 = scmp.lt.s32.totalorder (!%p239_p3), %s764_s21, 1 }
   0x7   : > { %242 = sbr.rel (%p239_p3) target bundleno = 189 (0xbd), region = 40 }
   0xc   : > { %v326_v0 = vld [vmem:[%s909_s2 + $0x10] sm:$0xff]  ;;  %v774_v1 = vmov 0   ;;  %v324_v2 = vld [vmem:[%s909_s2] sm:$0xff]  ;;  %s919_s21 = smov (!%p286_p4, %s764_s21), 1  ;;  %v327_v7 = vld [vmem:[%s909_s2 + $0x18] sm:$0xff]  ;;  %vm378_vm0 = vcmask 261120  }
   0xd   : > { %748 = vset.pattern.permute.xlu1 %v774_v1  ;;  %747 = vset.pattern.permute.xlu0 %v774_v1  ;;  %v435_v3 = vld [vmem:[%s911_s4] sm:$0xff]  ;;  %s837_s7 = sshll.u32 %s919_s21, 5  ;;  %v325_v15 = vld [vmem:[%s909_s2 + $0x8] sm:$0xff]  ;;  %v438_v21 = vld [vmem:[%s911_s4 + $0x18] sm:$0xff] }
   0xe   : > { %340 = vperm.xlu1 %748, %v326_v0   ;;  %330 = vperm.xlu0 %747, %v324_v2   ;;  %s293_s10 = scalar_lea.vmem %s907_s0, %s837_s7  ;;  %v436_v17 = vld [vmem:[%s911_s4 + $0x8] sm:$0xff]  ;;  %v718_v19 = vld [vmem:[%s908_s1] sm:$0xff]  ;;  %v437_v22 = vld [vmem:[%s911_s4 + $0x10] sm:$0xff]  ;;  %s882_s11 = scalar_lea.vmem %s912_s5, %s837_s7 }
   0xf   : > { %749 = vset.pattern.permute.xlu2 %v774_v1  ;;  %v687_v4 = vld [vmem:[%s293_s10 + $0x10] sm:$0xf]  ;;  %v717_v5 = vld [vmem:[%s293_s10 + $0x14] sm:$0xf0]  ;;  %v716_v6 = vld [vmem:[%s293_s10 + $0x14] sm:$0xf]  ;;  %s889_s14 = scalar_lea.vmem %s913_s6, %s837_s7 }
  0x10   : > { %441 = vperm.xlu2 %749, %v435_v3   ;;  %v688_v8 = vor.u32 %v717_v5, %v687_v4  ;;  %v689_v9 = vld [vmem:[%s293_s10 + $0x18] sm:$0xf0]  ;;  %v679_v10 = vld [vmem:[%s293_s10] sm:$0xf]  ;;  %v715_v11 = vld [vmem:[%s293_s10 + $0x4] sm:$0xf0] }
  0x11   : > { %v692_v12 = vor.u32 %v716_v6, %v689_v9  ;;  %v714_v13 = vld [vmem:[%s293_s10 + $0x4] sm:$0xf]  ;;  %v681_v14 = vld [vmem:[%s293_s10 + $0x8] sm:$0xf0]  ;;  %v680_v16 = vor.u32 %v715_v11, %v679_v10 }
  0x12   : > { %391 = vmatpush.bf16.msra.mxu0 %v688_v8  ;;  %481 = vmatpush.bf16.msra.mxu2 %v688_v8  ;;  %v684_v18 = vor.u32 %v714_v13, %v681_v14  ;;  %v720_v20 = vld [vmem:[%s910_s3] sm:$0xff]  ;;  %v719_v23 = vld [vmem:[%s908_s1 + $0x8] sm:$0xff] }
  0x13   : > { %410 = vmatpush.bf16.msra.mxu1 %v692_v12  ;;  %500 = vmatpush.bf16.msra.mxu3 %v692_v12  ;;  %v721_v24 = vld [vmem:[%s910_s3 + $0x8] sm:$0xff] }
  0x16   : > { %345 = vperm.xlu1 %748, %v327_v7   ;;  %335 = vperm.xlu0 %747, %v325_v15  }
  0x17   : > { %392 = vmatpush.bf16.msra.mxu0 %v680_v16  ;;  %482 = vmatpush.bf16.msra.mxu2 %v680_v16 }
  0x18   : > { %446 = vperm.xlu2 %749, %v436_v17   ;;  %411 = vmatpush.bf16.msra.mxu1 %v684_v18 }
  0x19   : > { %501 = vmatpush.bf16.msra.mxu3 %v684_v18 }
  0x1a   : > { %693 = vmatmul.msk.bf16.vlgmr.msra.gmra.mxu0 %vm378_vm0, %v718_v19  ;;  %705 = vmatmul.msk.bf16.vlgmr.msra.gmra.mxu2 %vm378_vm0, %v720_v20 }
  0x1b   : > { %695 = vmatmul.msk.bf16.vlgmr.msra.gmra.mxu1 %vm378_vm0, %v718_v19 }
  0x1c   : > { %707 = vmatmul.msk.bf16.vlgmr.msra.gmra.mxu3 %vm378_vm0, %v720_v20 }
  0x1e   : > { %456 = vperm.xlu1 %748, %v438_v21   ;;  %451 = vperm.xlu0 %747, %v437_v22  }
  0x2a   : > { %694 = vmatmul.msk.bf16.gmra.mxu0 %vm378_vm0, %v719_v23  ;;  %706 = vmatmul.msk.bf16.gmra.mxu2 %vm378_vm0, %v721_v24 }
  0x2b   : > { %696 = vmatmul.msk.bf16.gmra.mxu1 %vm378_vm0, %v719_v23 }
  0x2c   : > { %708 = vmatmul.msk.bf16.gmra.mxu3 %vm378_vm0, %v721_v24 }
  0x6a   : > { %v442_v30 = vpop.permute.xlu2 %441 }
  0x72   : > { %v447_v44 = vpop.permute.xlu2 %446 }
  0x80   : > { %v331_v25 = vpop.permute.xlu0 %330  ;;  %v341_v40 = vpop.permute.xlu1 %340 }
  0x88   : > { %v336_v35 = vpop.permute.xlu0 %335  ;;  %v346_v54 = vpop.permute.xlu1 %345 }
  0x90   : > { %v452_v56 = vpop.permute.xlu0 %451  ;;  %v457_v3 = vpop.permute.xlu1 %456 }
  0x97   : > { %v394_v26 = vpop.f32.mrf.mxu0 }
  0x98   : > { %v395_v27 = vadd.f32 %v394_v26, %v331_v25  ;;  %v413_v28 = vpop.f32.mrf.mxu1 }
  0x99   : > { %v414_v29 = vadd.f32 %v413_v28, %v331_v25 }
  0x9b   : > { %v423_v31 = vpack.c.bf16 %v414_v29, %v395_v27 }
  0x9d   : > { %427 = vst [vmem:[%s882_s11] sm:$0xff] %v423_v31  ;;  %v484_v32 = vpop.f32.mrf.mxu2 }
  0x9e   : > { %v485_v33 = vadd.f32 %v484_v32, %v442_v30 }
  0x9f   : > { %v503_v34 = vpop.f32.mrf.mxu3  ;;  %v396_v37 = vpop.f32.mrf.mxu0 }
  0xa0   : > { %v504_v36 = vadd.f32 %v503_v34, %v442_v30  ;;  %v397_v38 = vadd.f32 %v396_v37, %v336_v35  ;;  %v415_v39 = vpop.f32.mrf.mxu1 }
  0xa1   : > { %v416_v42 = vadd.f32 %v415_v39, %v336_v35 }
  0xa2   : > { %v513_v41 = vpack.c.bf16 %v504_v36, %v485_v33 }
  0xa3   : > { %v424_v43 = vpack.c.bf16 %v416_v42, %v397_v38 }
  0xa4   : > { %517 = vst [vmem:[%s889_s14] sm:$0xff] %v513_v41 }
  0xa5   : > { %428 = vst [vmem:[%s882_s11 + $0x8] sm:$0xff] %v424_v43  ;;  %v486_v45 = vpop.f32.mrf.mxu2 }
  0xa6   : > { %v487_v46 = vadd.f32 %v486_v45, %v447_v44 }
  0xa7   : > { %v505_v47 = vpop.f32.mrf.mxu3  ;;  %v399_v49 = vpop.f32.mrf.mxu0 }
  0xa8   : > { %v506_v48 = vadd.f32 %v505_v47, %v447_v44  ;;  %v400_v50 = vadd.f32 %v399_v49, %v341_v40  ;;  %v418_v51 = vpop.f32.mrf.mxu1 }
  0xa9   : > { %v419_v53 = vadd.f32 %v418_v51, %v341_v40 }
  0xaa   : > { %v514_v52 = vpack.c.bf16 %v506_v48, %v487_v46 }
  0xab   : > { %v425_v55 = vpack.c.bf16 %v419_v53, %v400_v50 }
  0xac   : > { %518 = vst [vmem:[%s889_s14 + $0x8] sm:$0xff] %v514_v52 }
  0xad   : > { %429 = vst [vmem:[%s882_s11 + $0x10] sm:$0xff] %v425_v55  ;;  %v489_v57 = vpop.f32.mrf.mxu2 }
  0xae   : > { %v490_v58 = vadd.f32 %v489_v57, %v452_v56 }
  0xaf   : > { %v508_v59 = vpop.f32.mrf.mxu3  ;;  %v401_v61 = vpop.f32.mrf.mxu0 }
  0xb0   : > { %v509_v60 = vadd.f32 %v508_v59, %v452_v56  ;;  %v402_v62 = vadd.f32 %v401_v61, %v346_v54  ;;  %v420_v63 = vpop.f32.mrf.mxu1 }
  0xb1   : > { %v421_v1 = vadd.f32 %v420_v63, %v346_v54 }
  0xb2   : > { %v515_v0 = vpack.c.bf16 %v509_v60, %v490_v58 }
  0xb3   : > { %v426_v2 = vpack.c.bf16 %v421_v1, %v402_v62 }
  0xb4   : > { %519 = vst [vmem:[%s889_s14 + $0x10] sm:$0xff] %v515_v0 }
  0xb5   : > { %430 = vst [vmem:[%s882_s11 + $0x18] sm:$0xff] %v426_v2  ;;  %v491_v4 = vpop.f32.mrf.mxu2 }
  0xb6   : > { %v492_v5 = vadd.f32 %v491_v4, %v457_v3 }
  0xb7   : > { %v510_v6 = vpop.f32.mrf.mxu3 }
  0xb8   : > { %v511_v7 = vadd.f32 %v510_v6, %v457_v3 }
  0xba   : > { %v516_v8 = vpack.c.bf16 %v511_v7, %v492_v5 }
  0xbc   : > { %520 = vst [vmem:[%s889_s14 + $0x18] sm:$0xff] %v516_v8 }
  0xbd PF: > { %s17_s23 = sadd.s32 1, %s772_s23   ;;  %s914_s21 = smov %s768_s22 }
  0xbe   : > { %p14_p5 = scmp.ge.s32.totalorder %s17_s23, 4   ;;  %s915_s22 = smov %s917_s24 }
  0xc0   :  { %16 = sbr.rel (!%p14_p5) target bundleno = 2 (0x2), region = 82 }

// kernel: bca_forward.5
= control target key start
LH: loop header
LB: loop body
LE: loop exit
PB: predicated region body
PF: predicated region fallthrough
CT: control target
= control target key end

     0   :  { %s2014_s18 = smov 0   ;;  %s2016_s19 = smov 0   ;;  %s2900_s0 = inlined_call_operand.vmem [shape: bf16[2,32,256], index: 0, kind: input, shape index: {}]   ;;  %s2901_s1 = inlined_call_operand.vmem [shape: bf16[2,32,256], index: 1, kind: input, shape index: {}]   ;;  %s2902_s2 = inlined_call_operand.vmem [shape: bf16[2,32,256], index: 2, kind: input, shape index: {}]   ;;  %s2903_s3 = inlined_call_operand.vmem [shape: f32[32,1], index: 3, kind: input, shape index: {}]   ;;  %s2904_s4 = inlined_call_operand.vmem [shape: f32[2,32,256], index: 4, kind: input, shape index: {}]   ;;  %s2905_s5 = inlined_call_operand.vmem [shape: f32[2,32,256], index: 5, kind: output, shape index: {}]  }
   0x1   :  { %s2018_s20 = smov 0  }
   0x2 LB: > { %s27_s21 = sadd.s32 1, %s1977_s19  ;;  %p1625_p0 = scmp.ge.s32.totalorder %s1981_s20, 1  ;;  %s1981_s20 = sphi %s2018_s20, %s15_s20   ;;  %s1977_s19 = sphi %s2016_s19, %s3082_s19   ;;  %s1973_s18 = sphi %s2014_s18, %s3081_s18  }
   0x3   : > { %p29_p1 = scmp.ge.s32.totalorder %s27_s21, 2  ;;  %p245_p2 = scmp.lt.s32.totalorder %s1981_s20, 3 }
   0x5   : > { %s3084_s21 = smov (%p29_p1, %s27_s21), 0  ;;  %p246_p3 = pnand %p1625_p0, %p245_p2 }
   0x7   : > { %249 = sbr.rel (%p246_p3) target bundleno = 1014 (0x3f6), region = 40 }
   0xc   : > { %p301_p4 = scmp.lt.s32.totalorder %s1973_s18, 1  ;;  %vm417_vm0 = vcmask 261120  }
   0xe   : > { %s3086_s18 = smov (!%p301_p4, %s1973_s18), 1 }
   0xf   : > { %s2035_s22 = sshll.u32 %s3086_s18, 5  ;;  %s1721_s15 = sshll.u32 %s3086_s18, 6 }
  0x10   : > { %s2041_s25 = scalar_lea.vmem %s2900_s0, %s2035_s22  ;;  %s314_s28 = scalar_lea.vmem %s2901_s1, %s2035_s22 }
  0x11   : > { %v1723_v0 = vld [vmem:[%s2041_s25 + $0x4] sm:$0xf]  ;;  %v1638_v1 = vld [vmem:[%s2041_s25] sm:$0xf]  ;;  %v1640_v2 = vld [vmem:[%s2041_s25 + $0x8] sm:$0xf0]  ;;  %s2765_s6 = scalar_lea.vmem %s2902_s2, %s2035_s22  ;;  %s2868_s22 = scalar_lea.vmem %s2904_s4, %s1721_s15 }
  0x12   : > { %v1724_v3 = vld [vmem:[%s2041_s25 + $0x4] sm:$0xf0]  ;;  %v1643_v4 = vor.u32 %v1723_v0, %v1640_v2  ;;  %v1662_v6 = vld [vmem:[%s314_s28 + $0x10] sm:$0xf]  ;;  %v1730_v7 = vld [vmem:[%s314_s28 + $0x14] sm:$0xf0] }
  0x13   : > { %v1639_v5 = vor.u32 %v1724_v3, %v1638_v1  ;;  %v1729_v8 = vld [vmem:[%s314_s28 + $0x14] sm:$0xf]  ;;  %v1664_v9 = vld [vmem:[%s314_s28 + $0x18] sm:$0xf0]  ;;  %v1663_v10 = vor.u32 %v1730_v7, %v1662_v6  ;;  %v1654_v12 = vld [vmem:[%s314_s28] sm:$0xf] }
  0x14   : > { %v1667_v11 = vor.u32 %v1729_v8, %v1664_v9  ;;  %v1728_v13 = vld [vmem:[%s314_s28 + $0x4] sm:$0xf0]  ;;  %v1727_v14 = vld [vmem:[%s314_s28 + $0x4] sm:$0xf]  ;;  %v1656_v15 = vld [vmem:[%s314_s28 + $0x8] sm:$0xf0] }
  0x15   : > { %373 = vxpose.binary.xlu0.c.b16.start [1/4] (short) %v1643_v4, %v1639_v5, 128  ;;  %v1655_v16 = vor.u32 %v1728_v13, %v1654_v12  ;;  %v1659_v17 = vor.u32 %v1727_v14, %v1656_v15  ;;  %v1725_v18 = vld [vmem:[%s2041_s25 + $0x14] sm:$0xf]  ;;  %v1646_v19 = vld [vmem:[%s2041_s25 + $0x10] sm:$0xf]  ;;  %v1648_v20 = vld [vmem:[%s2041_s25 + $0x18] sm:$0xf0] }
  0x16   : > { %472 = vmatpush.bf16.msra.mxu0 %v1663_v10  ;;  %561 = vmatpush.bf16.msra.mxu1 %v1667_v11  ;;  %v1726_v21 = vld [vmem:[%s2041_s25 + $0x14] sm:$0xf0]  ;;  %v1651_v23 = vor.u32 %v1725_v18, %v1648_v20  ;;  %s2874_s25 = scalar_lea.vmem %s2905_s5, %s1721_s15 }
  0x17   : > { %1737 = vmatpush.bf16.msra.mxu3 %v1667_v11  ;;  %1735 = vmatpush.bf16.msra.mxu2 %v1663_v10  ;;  %v1647_v22 = vor.u32 %v1726_v21, %v1646_v19 }
  0x1a   : > { %473 = vmatpush.bf16.msra.mxu0 %v1655_v16  ;;  %562 = vmatpush.bf16.msra.mxu1 %v1659_v17 }
  0x1b   : > { %1738 = vmatpush.bf16.msra.mxu3 %v1659_v17  ;;  %1736 = vmatpush.bf16.msra.mxu2 %v1655_v16 }
  0x25   : > { %374 = vxpose.binary.xlu0.c.b16.end [2/4] (short) %v1651_v23, %v1647_v22, 128 }
  0xc1   : > { %v381_v24 = vpop.trf.xlu0 }
  0xc2   : > { %1668 = vmatmul.msk.bf16.vlgmr.msra.gmra.mxu0 %vm417_vm0, %v381_v24  ;;  %1684 = vmatmul.msk.bf16.vlgmr.msra.gmra.mxu1 %vm417_vm0, %v381_v24 }
  0xc9   : > { %v382_v25 = vpop.trf.xlu0 }
  0xd1   : > { %v383_v26 = vpop.trf.xlu0 }
  0xd2   : > { %1669 = vmatmul.msk.bf16.gmra.mxu0 %vm417_vm0, %v383_v26  ;;  %1685 = vmatmul.msk.bf16.gmra.mxu1 %vm417_vm0, %v383_v26 }
  0xd9   : > { %v384_v27 = vpop.trf.xlu0 }
  0xe1   : > { %v385_v28 = vpop.trf.xlu0 }
  0xe2   : > { %1670 = vmatmul.msk.bf16.gmra.mxu0 %vm417_vm0, %v385_v28  ;;  %1686 = vmatmul.msk.bf16.gmra.mxu1 %vm417_vm0, %v385_v28 }
  0xe9   : > { %v386_v29 = vpop.trf.xlu0 }
  0xf1   : > { %v387_v30 = vpop.trf.xlu0 }
  0xf2   : > { %1671 = vmatmul.msk.bf16.gmra.mxu0 %vm417_vm0, %v387_v30  ;;  %1687 = vmatmul.msk.bf16.gmra.mxu1 %vm417_vm0, %v387_v30 }
  0xf9   : > { %v388_v31 = vpop.trf.xlu0 }
  0xfa   : > { %1695 = vmatmul.msk.bf16.vlgmr.msra.gmra.mxu3 %vm417_vm0, %v388_v31 }
 0x101   : > { %v389_v32 = vpop.trf.xlu0 }
 0x102   : > { %1672 = vmatmul.msk.bf16.gmra.mxu0 %vm417_vm0, %v389_v32  ;;  %1688 = vmatmul.msk.bf16.gmra.mxu1 %vm417_vm0, %v389_v32 }
 0x109   : > { %v390_v33 = vpop.trf.xlu0 }
 0x10a   : > { %1680 = vmatmul.msk.bf16.vlgmr.msra.gmra.mxu2 %vm417_vm0, %v390_v33  ;;  %1696 = vmatmul.msk.bf16.gmra.mxu3 %vm417_vm0, %v390_v33 }
 0x111   : > { %v391_v34 = vpop.trf.xlu0 }
 0x112   : > { %1673 = vmatmul.msk.bf16.gmra.mxu0 %vm417_vm0, %v391_v34  ;;  %1689 = vmatmul.msk.bf16.gmra.mxu1 %vm417_vm0, %v391_v34 }
 0x119   : > { %v392_v35 = vpop.trf.xlu0 }
 0x11a   : > { %1681 = vmatmul.msk.bf16.gmra.mxu2 %vm417_vm0, %v392_v35  ;;  %1697 = vmatmul.msk.bf16.gmra.mxu3 %vm417_vm0, %v392_v35 }
 0x121   : > { %v393_v36 = vpop.trf.xlu0 }
 0x122   : > { %1674 = vmatmul.msk.bf16.gmra.mxu0 %vm417_vm0, %v393_v36  ;;  %1690 = vmatmul.msk.bf16.gmra.mxu1 %vm417_vm0, %v393_v36 }
 0x129   : > { %v394_v37 = vpop.trf.xlu0 }
 0x12a   : > { %1682 = vmatmul.msk.bf16.gmra.mxu2 %vm417_vm0, %v394_v37  ;;  %1698 = vmatmul.msk.bf16.gmra.mxu3 %vm417_vm0, %v394_v37 }
 0x131   : > { %v395_v38 = vpop.trf.xlu0 }
 0x132   : > { %1675 = vmatmul.msk.bf16.gmra.mxu0 %vm417_vm0, %v395_v38  ;;  %1691 = vmatmul.msk.bf16.gmra.mxu1 %vm417_vm0, %v395_v38 }
 0x139   : > { %v396_v39 = vpop.trf.xlu0 }
 0x13a   : > { %1683 = vmatmul.msk.bf16.gmra.mxu2 %vm417_vm0, %v396_v39  ;;  %1699 = vmatmul.msk.bf16.gmra.mxu3 %vm417_vm0, %v396_v39 }
 0x13f   : > { %v2080_v40 = vpop.f32.mrf.mxu0  ;;  %v2082_v41 = vpop.f32.mrf.mxu1 }
 0x140   : > { %v644_v4 = vmax.f32 %v2080_v40, %v2082_v41 }
 0x142   : > { %1676 = vmatmul.msk.bf16.gmra.mxu0 %vm417_vm0, %v382_v25  ;;  %1692 = vmatmul.msk.bf16.gmra.mxu1 %vm417_vm0, %v382_v25 }
 0x147   : > { %v2086_v42 = vpop.f32.mrf.mxu0  ;;  %v2088_v43 = vpop.f32.mrf.mxu1 }
 0x148   : > { %v647_v11 = vmax.f32 %v2086_v42, %v2088_v43 }
 0x14f   : > { %v2090_v44 = vpop.f32.mrf.mxu0  ;;  %v2092_v45 = vpop.f32.mrf.mxu1 }
 0x150   : > { %v650_v62 = vmax.f32 %v2090_v44, %v2092_v45 }
 0x152   : > { %1677 = vmatmul.msk.bf16.gmra.mxu0 %vm417_vm0, %v384_v27  ;;  %1693 = vmatmul.msk.bf16.gmra.mxu1 %vm417_vm0, %v384_v27 }
 0x157   : > { %v2096_v46 = vpop.f32.mrf.mxu0  ;;  %v2098_v47 = vpop.f32.mrf.mxu1 }
 0x158   : > { %v653_v5 = vmax.f32 %v2096_v46, %v2098_v47 }
 0x15f   : > { %v2100_v48 = vpop.f32.mrf.mxu0  ;;  %v2102_v49 = vpop.f32.mrf.mxu1 }
 0x160   : > { %v656_v57 = vmax.f32 %v2100_v48, %v2102_v49 }
 0x162   : > { %1678 = vmatmul.msk.bf16.gmra.mxu0 %vm417_vm0, %v386_v29  ;;  %1694 = vmatmul.msk.bf16.gmra.mxu1 %vm417_vm0, %v386_v29 }
 0x167   : > { %v2106_v50 = vpop.f32.mrf.mxu0  ;;  %v2108_v51 = vpop.f32.mrf.mxu1 }
 0x168   : > { %v659_v63 = vmax.f32 %v2106_v50, %v2108_v51 }
 0x16f   : > { %v2110_v52 = vpop.f32.mrf.mxu0  ;;  %v2112_v53 = vpop.f32.mrf.mxu1 }
 0x170   : > { %v662_v54 = vmax.f32 %v2110_v52, %v2112_v53 }
 0x172   : > { %663 = vmax.xlane.f32.xlu2 %v662_v54  ;;  %1679 = vmatmul.msk.bf16.gmra.mxu0 %vm417_vm0, %v388_v31 }
 0x177   : > { %v2117_v55 = vpop.f32.mrf.mxu0  ;;  %v2119_v56 = vpop.f32.mrf.mxu1 }
 0x178   : > { %v665_v58 = vmax.f32 %v2117_v55, %v2119_v56 }
 0x17a   : > { %657 = vmax.xlane.f32.xlu2 %v656_v57  ;;  %666 = vmax.xlane.f32.xlu1 %v665_v58 }
 0x17d   : > { %v2125_v59 = vpop.f32.mrf.mxu3 }
 0x17e   : > { %2983 = vst [vmem:[#allocation2_spill] sm:$0xff] %v2125_v59 }
 0x17f   : > { %v2127_v60 = vpop.f32.mrf.mxu0  ;;  %v2129_v61 = vpop.f32.mrf.mxu1 }
 0x180   : > { %v668_v0 = vmax.f32 %v2127_v60, %v2129_v61 }
 0x182   : > { %651 = vmax.xlane.f32.xlu2 %v650_v62  ;;  %660 = vmax.xlane.f32.xlu1 %v659_v63 }
 0x183   : > { %669 = vmax.xlane.f32.xlu0 %v668_v0 }
 0x185   : > { %v2137_v1 = vpop.f32.mrf.mxu3 }
 0x186   : > { %2984 = vst [vmem:[#allocation3_spill] sm:$0xff] %v2137_v1 }
 0x187   : > { %v2139_v2 = vpop.f32.mrf.mxu0  ;;  %v2141_v3 = vpop.f32.mrf.mxu1 }
 0x188   : > { %v671_v16 = vmax.f32 %v2139_v2, %v2141_v3 }
 0x18a   : > { %645 = vmax.xlane.f32.xlu2 %v644_v4  ;;  %654 = vmax.xlane.f32.xlu1 %v653_v5 }
 0x18d   : > { %v2147_v6 = vpop.f32.mrf.mxu2  ;;  %v2149_v7 = vpop.f32.mrf.mxu3 }
 0x18e   : > { %v716_v8 = vmax.f32 %v2147_v6, %v2149_v7 }
 0x18f   : > { %v2153_v9 = vpop.f32.mrf.mxu0  ;;  %v2155_v10 = vpop.f32.mrf.mxu1 }
 0x190   : > { %v674_v23 = vmax.f32 %v2153_v9, %v2155_v10 }
 0x192   : > { %648 = vmax.xlane.f32.xlu1 %v647_v11  ;;  %717 = vmax.xlane.f32.xlu2 %v716_v8 }
 0x195   : > { %v2159_v12 = vpop.f32.mrf.mxu2  ;;  %v2161_v13 = vpop.f32.mrf.mxu3 }
 0x196   : > { %2985 = vst [vmem:[#allocation4_spill] sm:$0xff] %v2159_v12  ;;  %v719_v29 = vmax.f32 %v2159_v12, %v2161_v13 }
 0x197   : > { %2986 = vst [vmem:[#allocation5_spill] sm:$0xff] %v2161_v13  ;;  %v2163_v14 = vpop.f32.mrf.mxu0  ;;  %v2165_v15 = vpop.f32.mrf.mxu1 }
 0x198   : > { %v677_v17 = vmax.f32 %v2163_v14, %v2165_v15 }
 0x19a   : > { %672 = vmax.xlane.f32.xlu1 %v671_v16  ;;  %678 = vmax.xlane.f32.xlu2 %v677_v17 }
 0x19d   : > { %v2171_v18 = vpop.f32.mrf.mxu2  ;;  %v2173_v19 = vpop.f32.mrf.mxu3 }
 0x19e   : > { %v722_v20 = vmax.f32 %v2171_v18, %v2173_v19 }
 0x19f   : > { %v2177_v21 = vpop.f32.mrf.mxu0  ;;  %v2179_v22 = vpop.f32.mrf.mxu1 }
 0x1a0   : > { %v680_v26 = vmax.f32 %v2177_v21, %v2179_v22 }
 0x1a2   : > { %675 = vmax.xlane.f32.xlu1 %v674_v23  ;;  %723 = vmax.xlane.f32.xlu2 %v722_v20 }
 0x1a5   : > { %v2183_v24 = vpop.f32.mrf.mxu2  ;;  %v2185_v25 = vpop.f32.mrf.mxu3 }
 0x1a6   : > { %2987 = vst [vmem:[#allocation6_spill] sm:$0xff] %v2183_v24  ;;  %v725_v34 = vmax.f32 %v2183_v24, %v2185_v25 }
 0x1a7   : > { %2988 = vst [vmem:[#allocation7_spill] sm:$0xff] %v2185_v25  ;;  %v2189_v27 = vpop.f32.mrf.mxu0  ;;  %v2191_v28 = vpop.f32.mrf.mxu1 }
 0x1a8   : > { %v683_v35 = vmax.f32 %v2189_v27, %v2191_v28 }
 0x1aa   : > { %720 = vmax.xlane.f32.xlu1 %v719_v29  ;;  %681 = vmax.xlane.f32.xlu2 %v680_v26 }
 0x1ad   : > { %v2195_v30 = vpop.f32.mrf.mxu2  ;;  %v2197_v31 = vpop.f32.mrf.mxu3 }
 0x1ae   : > { %v728_v57 = vmax.f32 %v2195_v30, %v2197_v31 }
 0x1af   : > { %v2199_v32 = vpop.f32.mrf.mxu0  ;;  %v2201_v33 = vpop.f32.mrf.mxu1 }
 0x1b0   : > { %v686_v38 = vmax.f32 %v2199_v32, %v2201_v33 }
 0x1b2   : > { %726 = vmax.xlane.f32.xlu1 %v725_v34  ;;  %684 = vmax.xlane.f32.xlu2 %v683_v35 }
 0x1b5   : > { %v2207_v36 = vpop.f32.mrf.mxu2  ;;  %v2209_v37 = vpop.f32.mrf.mxu3 }
 0x1b6   : > { %v731_v5 = vmax.f32 %v2207_v36, %v2209_v37 }
 0x1b7   : > { %v2213_v39 = vpop.f32.mrf.mxu0  ;;  %v2215_v54 = vpop.f32.mrf.mxu1 }
 0x1b8   : > { %v689_v16 = vmax.f32 %v2213_v39, %v2215_v54 }
 0x1ba   : > { %729 = vmax.xlane.f32.xlu2 %v728_v57  ;;  %687 = vmax.xlane.f32.xlu1 %v686_v38 }
 0x1bd   : > { %v2219_v58 = vpop.f32.mrf.mxu2  ;;  %v2221_v62 = vpop.f32.mrf.mxu3 }
 0x1be   : > { %v734_v63 = vmax.f32 %v2219_v58, %v2221_v62 }
 0x1bf   : > { %v2225_v0 = vpop.f32.mrf.mxu0  ;;  %v2227_v4 = vpop.f32.mrf.mxu1 }
 0x1c0   : > { %2989 = vst [vmem:[#allocation8_spill] sm:$0xff] %v2225_v0  ;;  %v692_v17 = vmax.f32 %v2225_v0, %v2227_v4 }
 0x1c1   : > { %2990 = vst [vmem:[#allocation9_spill] sm:$0xff] %v2227_v4 }
 0x1c2   : > { %732 = vmax.xlane.f32.xlu1 %v731_v5  ;;  %735 = vmax.xlane.f32.xlu2 %v734_v63 }
 0x1c5   : > { %v2239_v20 = vpop.f32.mrf.mxu2  ;;  %v2241_v23 = vpop.f32.mrf.mxu3 }
 0x1c6   : > { %v737_v26 = vmax.f32 %v2239_v20, %v2241_v23 }
 0x1c7   : > { %v2231_v8 = vpop.f32.mrf.mxu0  ;;  %v2233_v11 = vpop.f32.mrf.mxu1 }
 0x1c8   : > { %2991 = vst [vmem:[#allocation10_spill] sm:$0xff] %v2231_v8  ;;  %v695_v63 = vmax.f32 %v2231_v8, %v2233_v11 }
 0x1c9   : > { %2992 = vst [vmem:[#allocation11_spill] sm:$0xff] %v2233_v11 }
 0x1ca   : > { %690 = vmax.xlane.f32.xlu1 %v689_v16  ;;  %693 = vmax.xlane.f32.xlu2 %v692_v17 }
 0x1cf   : > { %v2245_v29 = vpop.f32.mrf.mxu0  ;;  %v2247_v34 = vpop.f32.mrf.mxu1 }
 0x1d0   : > { %2993 = vst [vmem:[#allocation12_spill] sm:$0xff] %v2245_v29  ;;  %v698_v35 = vmax.f32 %v2245_v29, %v2247_v34 }
 0x1d1   : > { %2994 = vst [vmem:[#allocation13_spill] sm:$0xff] %v2247_v34 }
 0x1d2   : > { %699 = vmax.xlane.f32.xlu2 %v698_v35  ;;  %738 = vmax.xlane.f32.xlu1 %v737_v26 }
 0x1d7   : > { %v2251_v38 = vpop.f32.mrf.mxu0  ;;  %v2253_v57 = vpop.f32.mrf.mxu1 }
 0x1d8   : > { %2995 = vst [vmem:[#allocation14_spill] sm:$0xff] %v2251_v38  ;;  %v701_v4 = vmax.f32 %v2251_v38, %v2253_v57 }
 0x1d9   : > { %2996 = vst [vmem:[#allocation15_spill] sm:$0xff] %v2253_v57 }
 0x1da   : > { %696 = vmax.xlane.f32.xlu1 %v695_v63 }
 0x1df   : > { %v2257_v5 = vpop.f32.mrf.mxu0  ;;  %v2259_v16 = vpop.f32.mrf.mxu1 }
 0x1e0   : > { %2997 = vst [vmem:[#allocation16_spill] sm:$0xff] %v2257_v5  ;;  %v704_v17 = vmax.f32 %v2257_v5, %v2259_v16 }
 0x1e1   : > { %2998 = vst [vmem:[#allocation17_spill] sm:$0xff] %v2259_v16 }
 0x1e2   : > { %705 = vmax.xlane.f32.xlu2 %v704_v17  ;;  %702 = vmax.xlane.f32.xlu1 %v701_v4 }
 0x1e5   : > { %v664_v26 = vpop.xlane.xlu2 %663 }
 0x1e6   : > { %v752_v35 = vsub.f32 %v2110_v52, %v664_v26  ;;  %v753_v0 = vsub.f32 %v2112_v53, %v664_v26 }
 0x1e7   : > { %v2267_v34 = vpop.f32.mrf.mxu0  ;;  %v2269_v63 = vpop.f32.mrf.mxu1 }
 0x1e8   : > { %2999 = vst [vmem:[#allocation18_spill] sm:$0xff] %v2267_v34  ;;  %v810_v11 = vpack.c.bf16 %v753_v0, %v752_v35  ;;  %v707_v8 = vmax.f32 %v2267_v34, %v2269_v63 }
 0x1e9   : > { %3000 = vst [vmem:[#allocation19_spill] sm:$0xff] %v2269_v63 }
 0x1ea   : > { %v848_v29 = vunpack.c.l.bf16 %v810_v11  ;;  %v849_v16 = vunpack.c.h.bf16 %v810_v11  ;;  %708 = vmax.xlane.f32.xlu1 %v707_v8 }
 0x1ec   : > { %v924_v5 = vmul.f32 1.442695, %v848_v29  ;;  %v926_v13 = vmul.f32 1.442695, %v849_v16 }
 0x1ed   : > { %v2273_v17 = vpop.xlane.xlu2 %657  ;;  %v667_v4 = vpop.xlane.xlu1 %666 }
 0x1ee   : > { %1767 = vpow2.f32 %v924_v5  ;;  %v754_v52 = vsub.f32 %v2117_v55, %v667_v4  ;;  %v755_v53 = vsub.f32 %v2119_v56, %v667_v4 }
 0x1ef   : > { %1769 = vpow2.f32 %v926_v13  ;;  %v2277_v26 = vpop.f32.mrf.mxu0 }
 0x1f0   : > { %3001 = vst [vmem:[#allocation20_spill] sm:$0xff] %v2277_v26  ;;  %v710_v0 = vmax.f32 %v2277_v26, %v2125_v59  ;;  %v811_v35 = vpack.c.bf16 %v755_v53, %v754_v52 }
 0x1f2   : > { %711 = vmax.xlane.f32.xlu2 %v710_v0  ;;  %v850_v11 = vunpack.c.l.bf16 %v811_v35  ;;  %v851_v8 = vunpack.c.h.bf16 %v811_v35 }
 0x1f4   : > { %v1768_v29 = vpop.eup %1767  ;;  %v928_v63 = vmul.f32 1.442695, %v850_v11  ;;  %v930_v34 = vmul.f32 1.442695, %v851_v8 }
 0x1f5   : > { %v1770_v16 = vpop.eup %1769  ;;  %v2281_v12 = vpop.xlane.xlu2 %651 }
 0x1f6   : > { %v2283_v5 = vpop.xlane.xlu1 %660  ;;  %v670_v55 = vpop.xlane.xlu0 %669  ;;  %1771 = vpow2.f32 %v928_v63  ;;  %v2291_v53 = vpack.c.bf16 %v1770_v16, %v1768_v29 }
 0x1f7   : > { %v756_v56 = vsub.f32 %v2127_v60, %v670_v55  ;;  %v757_v13 = vsub.f32 %v2129_v61, %v670_v55  ;;  %v2287_v4 = vpop.f32.mrf.mxu0  ;;  %1773 = vpow2.f32 %v930_v34 }
 0x1f8   : > { %3002 = vst [vmem:[#allocation21_spill] sm:$0xff] %v2287_v4  ;;  %v713_v52 = vmax.f32 %v2287_v4, %v2137_v1  ;;  %v2920_v35 = vunpack.c.l.bf16 %v2291_v53  ;;  %v2919_v11 = vunpack.c.h.bf16 %v2291_v53 }
 0x1f9   : > { %3003 = vst [vmem:[#allocation22_spill] sm:$0xff] %v2291_v53  ;;  %v812_v0 = vpack.c.bf16 %v757_v13, %v756_v56 }
 0x1fa   : > { %714 = vmax.xlane.f32.xlu1 %v713_v52  ;;  %v1142_v60 = vadd.f32 %v2919_v11, %v2920_v35 }
 0x1fb   : > { %v852_v8 = vunpack.c.l.bf16 %v812_v0  ;;  %v853_v59 = vunpack.c.h.bf16 %v812_v0 }
 0x1fc   : > { %v1772_v29 = vpop.eup %1771  ;;  %1143 = vadd.xlane.f32.xlu2 %v1142_v60 }
 0x1fd   : > { %v2299_v61 = vpop.xlane.xlu2 %645  ;;  %v932_v16 = vmul.f32 1.442695, %v852_v8  ;;  %v1774_v34 = vpop.eup %1773  ;;  %v934_v55 = vmul.f32 1.442695, %v853_v59 }
 0x1fe   : > { %v2301_v63 = vpop.xlane.xlu1 %654  ;;  %v2303_v56 = vpack.c.bf16 %v1774_v34, %v1772_v29 }
 0x1ff   : > { %1775 = vpow2.f32 %v932_v16 }
 0x200   : > { %3004 = vst [vmem:[#allocation23_spill] sm:$0xff] %v2303_v56  ;;  %v2922_v13 = vunpack.c.l.bf16 %v2303_v56  ;;  %1777 = vpow2.f32 %v934_v55  ;;  %v2921_v52 = vunpack.c.h.bf16 %v2303_v56 }
 0x202   : > { %v1145_v0 = vadd.f32 %v2921_v52, %v2922_v13 }
 0x204   : > { %1146 = vadd.xlane.f32.xlu1 %v1145_v0 }
 0x205   : > { %v2313_v35 = vpop.xlane.xlu2 %717  ;;  %v1776_v8 = vpop.eup %1775 }
 0x206   : > { %v2311_v11 = vpop.xlane.xlu1 %648  ;;  %v1778_v59 = vpop.eup %1777 }
 0x207   : > { %v2315_v60 = vpack.c.bf16 %v1778_v59, %v1776_v8 }
 0x209   : > { %3005 = vst [vmem:[#allocation24_spill] sm:$0xff] %v2315_v60  ;;  %v2949_v29 = vunpack.c.l.bf16 %v2315_v60  ;;  %v2936_v16 = vunpack.c.h.bf16 %v2315_v60 }
 0x20b   : > { %v1148_v52 = vadd.f32 %v2936_v16, %v2949_v29 }
 0x20d   : > { %v679_v55 = vpop.xlane.xlu2 %678  ;;  %1149 = vadd.xlane.f32.xlu2 %v1148_v52 }
 0x20e   : > { %v673_v34 = vpop.xlane.xlu1 %672  ;;  %v762_v0 = vsub.f32 %v2163_v14, %v679_v55  ;;  %v763_v8 = vsub.f32 %v2165_v15, %v679_v55 }
 0x20f   : > { %v758_v13 = vsub.f32 %v2139_v2, %v673_v34  ;;  %v759_v56 = vsub.f32 %v2141_v3, %v673_v34 }
 0x210   : > { %v815_v53 = vpack.c.bf16 %v763_v8, %v762_v0 }
 0x211   : > { %v813_v59 = vpack.c.bf16 %v759_v56, %v758_v13 }
 0x212   : > { %v858_v26 = vunpack.c.l.bf16 %v815_v53  ;;  %v859_v57 = vunpack.c.h.bf16 %v815_v53 }
 0x213   : > { %v854_v1 = vunpack.c.l.bf16 %v813_v59  ;;  %v855_v4 = vunpack.c.h.bf16 %v813_v59 }
 0x214   : > { %v944_v38 = vmul.f32 1.442695, %v858_v26  ;;  %v946_v2 = vmul.f32 1.442695, %v859_v57 }
 0x215   : > { %v936_v25 = vmul.f32 1.442695, %v854_v1  ;;  %v938_v24 = vmul.f32 1.442695, %v855_v4  ;;  %v2327_v16 = vpop.xlane.xlu2 %723 }
 0x216   : > { %v676_v60 = vpop.xlane.xlu1 %675 }
 0x217   : > { %1779 = vpow2.f32 %v936_v25  ;;  %v760_v3 = vsub.f32 %v2153_v9, %v676_v60  ;;  %v761_v14 = vsub.f32 %v2155_v10, %v676_v60 }
 0x218   : > { %1781 = vpow2.f32 %v938_v24 }
 0x219   : > { %v814_v15 = vpack.c.bf16 %v761_v14, %v760_v3  ;;  %1783 = vpow2.f32 %v944_v38 }
 0x21a   : > { %1785 = vpow2.f32 %v946_v2 }
 0x21b   : > { %v856_v56 = vunpack.c.l.bf16 %v814_v15  ;;  %v857_v13 = vunpack.c.h.bf16 %v814_v15 }
 0x21d   : > { %v1780_v52 = vpop.eup %1779  ;;  %v940_v53 = vmul.f32 1.442695, %v856_v56  ;;  %v942_v1 = vmul.f32 1.442695, %v857_v13  ;;  %v682_v34 = vpop.xlane.xlu2 %681 }
 0x21e   : > { %v1782_v4 = vpop.eup %1781  ;;  %v2331_v26 = vpop.xlane.xlu1 %720  ;;  %v764_v25 = vsub.f32 %v2177_v21, %v682_v34  ;;  %v765_v9 = vsub.f32 %v2179_v22, %v682_v34 }
 0x21f   : > { %1787 = vpow2.f32 %v940_v53  ;;  %v1784_v57 = vpop.eup %1783  ;;  %v2335_v10 = vpack.c.bf16 %v1782_v4, %v1780_v52 }
 0x220   : > { %1789 = vpow2.f32 %v942_v1  ;;  %v1786_v24 = vpop.eup %1785  ;;  %v816_v38 = vpack.c.bf16 %v765_v9, %v764_v25  ;;  %v748_v9 = vsub.f32 %v2100_v48, %v2273_v17 }
 0x221   : > { %v1078_v60 = vunpack.c.l.bf16 %v2335_v10  ;;  %v2956_v55 = vunpack.c.h.bf16 %v2335_v10  ;;  %v2343_v21 = vpack.c.bf16 %v1786_v24, %v1784_v57 }
 0x222   : > { %v860_v0 = vunpack.c.l.bf16 %v816_v38  ;;  %v861_v8 = vunpack.c.h.bf16 %v816_v38 }
 0x223   : > { %v1151_v59 = vadd.f32 %v2956_v55, %v1078_v60  ;;  %v1082_v53 = vunpack.c.l.bf16 %v2343_v21  ;;  %v1083_v1 = vunpack.c.h.bf16 %v2343_v21 }
 0x224   : > { %v948_v22 = vmul.f32 1.442695, %v860_v0  ;;  %v950_v14 = vmul.f32 1.442695, %v861_v8 }
 0x225   : > { %v1788_v2 = vpop.eup %1787  ;;  %1152 = vadd.xlane.f32.xlu1 %v1151_v59  ;;  %v685_v56 = vpop.xlane.xlu2 %684  ;;  %v1157_v38 = vadd.f32 %v1083_v1, %v1082_v53 }
 0x226   : > { %v1790_v3 = vpop.eup %1789  ;;  %v2345_v15 = vpop.xlane.xlu1 %726  ;;  %v766_v13 = vsub.f32 %v2189_v27, %v685_v56  ;;  %v767_v52 = vsub.f32 %v2191_v28, %v685_v56  ;;  %1791 = vpow2.f32 %v948_v22  ;;  %v749_v27 = vsub.f32 %v2102_v49, %v2273_v17 }
 0x227   : > { %v2351_v4 = vpack.c.bf16 %v1790_v3, %v1788_v2  ;;  %1793 = vpow2.f32 %v950_v14 }
 0x228   : > { %v817_v34 = vpack.c.bf16 %v767_v52, %v766_v13  ;;  %v808_v3 = vpack.c.bf16 %v749_v27, %v748_v9 }
 0x229   : > { %v1080_v25 = vunpack.c.l.bf16 %v2351_v4  ;;  %v1081_v57 = vunpack.c.h.bf16 %v2351_v4 }
 0x22a   : > { %v862_v28 = vunpack.c.l.bf16 %v817_v34  ;;  %v863_v24 = vunpack.c.h.bf16 %v817_v34  ;;  %v845_v27 = vunpack.c.h.bf16 %v808_v3 }
 0x22b   : > { %v1154_v0 = vadd.f32 %v1081_v57, %v1080_v25 }
 0x22c   : > { %v952_v8 = vmul.f32 1.442695, %v862_v28  ;;  %v954_v59 = vmul.f32 1.442695, %v863_v24  ;;  %v1792_v2 = vpop.eup %1791  ;;  %v844_v28 = vunpack.c.l.bf16 %v808_v3  ;;  %v744_v3 = vsub.f32 %v2090_v44, %v2281_v12 }
 0x22d   : > { %1158 = vadd.xlane.f32.xlu1 %v1157_v38  ;;  %1155 = vadd.xlane.f32.xlu2 %v1154_v0  ;;  %v730_v49 = vpop.xlane.xlu2 %729  ;;  %v1794_v22 = vpop.eup %1793  ;;  %v751_v0 = vsub.f32 %v2108_v51, %v2283_v5  ;;  %v918_v51 = vmul.f32 1.442695, %v845_v27 }
 0x22e   : > { %v688_v48 = vpop.xlane.xlu1 %687  ;;  %1795 = vpow2.f32 %v952_v8  ;;  %v2369_v56 = vpack.c.bf16 %v1794_v22, %v1792_v2  ;;  %v796_v13 = vsub.f32 %v2195_v30, %v730_v49  ;;  %v797_v52 = vsub.f32 %v2197_v31, %v730_v49 }
 0x22f   : > { %v768_v17 = vsub.f32 %v2199_v32, %v688_v48  ;;  %v769_v14 = vsub.f32 %v2201_v33, %v688_v48  ;;  %1797 = vpow2.f32 %v954_v59  ;;  %v750_v33 = vsub.f32 %v2106_v50, %v2283_v5 }
 0x230   : > { %v1084_v24 = vunpack.c.l.bf16 %v2369_v56  ;;  %v1085_v9 = vunpack.c.h.bf16 %v2369_v56  ;;  %v832_v31 = vpack.c.bf16 %v797_v52, %v796_v13  ;;  %v916_v49 = vmul.f32 1.442695, %v844_v28 }
 0x231   : > { %v818_v34 = vpack.c.bf16 %v769_v14, %v768_v17  ;;  %v745_v50 = vsub.f32 %v2092_v45, %v2281_v12  ;;  %v809_v5 = vpack.c.bf16 %v751_v0, %v750_v33 }
 0x232   : > { %v1160_v30 = vadd.f32 %v1085_v9, %v1084_v24  ;;  %v892_v14 = vunpack.c.l.bf16 %v832_v31  ;;  %v893_v44 = vunpack.c.h.bf16 %v832_v31 }
 0x233   : > { %v864_v38 = vunpack.c.l.bf16 %v818_v34  ;;  %v865_v32 = vunpack.c.h.bf16 %v818_v34  ;;  %v806_v13 = vpack.c.bf16 %v745_v50, %v744_v3  ;;  %v846_v28 = vunpack.c.l.bf16 %v809_v5 }
 0x234   : > { %v1796_v2 = vpop.eup %1795  ;;  %v1012_v12 = vmul.f32 1.442695, %v892_v14 }
 0x235   : > { %v956_v8 = vmul.f32 1.442695, %v864_v38  ;;  %v958_v59 = vmul.f32 1.442695, %v865_v32  ;;  %1161 = vadd.xlane.f32.xlu2 %v1160_v30  ;;  %v1798_v17 = vpop.eup %1797  ;;  %v840_v32 = vunpack.c.l.bf16 %v806_v13  ;;  %v736_v33 = vpop.xlane.xlu2 %735  ;;  %v920_v50 = vmul.f32 1.442695, %v846_v28 }
 0x236   : > { %v733_v48 = vpop.xlane.xlu1 %732  ;;  %v2387_v22 = vpack.c.bf16 %v1798_v17, %v1796_v2  ;;  %v1014_v2 = vmul.f32 1.442695, %v893_v44  ;;  %v746_v17 = vsub.f32 %v2096_v46, %v2301_v63  ;;  %v841_v28 = vunpack.c.h.bf16 %v806_v13 }
 0x237   : > { %1799 = vpow2.f32 %v956_v8  ;;  %v798_v31 = vsub.f32 %v2207_v36, %v733_v48 }
 0x238   : > { %1801 = vpow2.f32 %v958_v59  ;;  %v1086_v52 = vunpack.c.l.bf16 %v2387_v22  ;;  %v1087_v34 = vunpack.c.h.bf16 %v2387_v22  ;;  %v847_v59 = vunpack.c.h.bf16 %v809_v5 }
 0x239   : > { %1803 = vpow2.f32 %v916_v49  ;;  %v799_v49 = vsub.f32 %v2209_v37, %v733_v48  ;;  %v801_v5 = vsub.f32 %v2221_v62, %v736_v33 }
 0x23a   : > { %1805 = vpow2.f32 %v918_v51  ;;  %v1163_v45 = vadd.f32 %v1087_v34, %v1086_v52  ;;  %v922_v46 = vmul.f32 1.442695, %v847_v59 }
 0x23b   : > { %1807 = vpow2.f32 %v1012_v12  ;;  %v908_v12 = vmul.f32 1.442695, %v840_v32 }
 0x23c   : > { %1164 = vadd.xlane.f32.xlu1 %v1163_v45  ;;  %1809 = vpow2.f32 %v1014_v2  ;;  %v741_v2 = vsub.f32 %v2082_v41, %v2299_v61 }
 0x23d   : > { %v1800_v38 = vpop.eup %1799  ;;  %1811 = vpow2.f32 %v920_v50  ;;  %v792_v50 = vsub.f32 %v2171_v18, %v2327_v16 }
 0x23e   : > { %v691_v27 = vpop.xlane.xlu1 %690  ;;  %v1802_v8 = vpop.eup %1801 }
 0x23f   : > { %v770_v0 = vsub.f32 %v2213_v39, %v691_v27  ;;  %v771_v30 = vsub.f32 %v2215_v54, %v691_v27  ;;  %v1804_v3 = vpop.eup %1803  ;;  %v2401_v14 = vpack.c.bf16 %v1802_v8, %v1800_v38  ;;  %v747_v39 = vsub.f32 %v2098_v47, %v2301_v63 }
 0x240   : > { %v1806_v45 = vpop.eup %1805  ;;  %v800_v54 = vsub.f32 %v2219_v58, %v736_v33  ;;  %v833_v27 = vpack.c.bf16 %v799_v49, %v798_v31  ;;  %v740_v8 = vsub.f32 %v2080_v40, %v2299_v61  ;;  %v2425_v61 = vpop.xlane.xlu2 %693 }
 0x241   : > { %v819_v51 = vpack.c.bf16 %v771_v30, %v770_v0  ;;  %v1088_v37 = vunpack.c.l.bf16 %v2401_v14  ;;  %v1089_v48 = vunpack.c.h.bf16 %v2401_v14  ;;  %v2413_v58 = vpack.c.bf16 %v1806_v45, %v1804_v3  ;;  %v1808_v13 = vpop.eup %1807 }
 0x242   : > { %v807_v62 = vpack.c.bf16 %v747_v39, %v746_v17  ;;  %v834_v33 = vpack.c.bf16 %v801_v5, %v800_v54  ;;  %v910_v30 = vmul.f32 1.442695, %v841_v28  ;;  %v894_v59 = vunpack.c.l.bf16 %v833_v27  ;;  %v1810_v3 = vpop.eup %1809 }
 0x243   : > { %v866_v36 = vunpack.c.l.bf16 %v819_v51  ;;  %v867_v44 = vunpack.c.h.bf16 %v819_v51  ;;  %v1166_v47 = vadd.f32 %v1089_v48, %v1088_v37  ;;  %v2946_v31 = vunpack.c.l.bf16 %v2413_v58  ;;  %v1812_v45 = vpop.eup %1811 }
 0x244   : > { %v2939_v49 = vunpack.c.h.bf16 %v2413_v58  ;;  %v842_v32 = vunpack.c.l.bf16 %v807_v62  ;;  %v793_v17 = vsub.f32 %v2173_v19, %v2327_v16  ;;  %v895_v51 = vunpack.c.h.bf16 %v833_v27 }
 0x245   : > { %v960_v38 = vmul.f32 1.442695, %v866_v36  ;;  %v962_v0 = vmul.f32 1.442695, %v867_v44  ;;  %1167 = vadd.xlane.f32.xlu2 %v1166_v47  ;;  %v896_v40 = vunpack.c.l.bf16 %v834_v33  ;;  %v843_v39 = vunpack.c.h.bf16 %v807_v62 }
 0x246   : > { %v739_v63 = vpop.xlane.xlu1 %738  ;;  %v1016_v54 = vmul.f32 1.442695, %v894_v59  ;;  %v897_v41 = vunpack.c.h.bf16 %v834_v33  ;;  %v1136_v36 = vadd.f32 %v2939_v49, %v2946_v31  ;;  %v2431_v18 = vpack.c.bf16 %v1810_v3, %v1808_v13 }
 0x247   : > { %1813 = vpow2.f32 %v960_v38  ;;  %v804_v19 = vpack.c.bf16 %v741_v2, %v740_v8  ;;  %v912_v16 = vmul.f32 1.442695, %v842_v32  ;;  %v830_v28 = vpack.c.bf16 %v793_v17, %v792_v50 }
 0x248   : > { %1815 = vpow2.f32 %v962_v0  ;;  %v1020_v0 = vmul.f32 1.442695, %v896_v40  ;;  %v802_v47 = vsub.f32 %v2239_v20, %v739_v63  ;;  %v803_v62 = vsub.f32 %v2241_v23, %v739_v63 }
 0x249   : > { %1817 = vpow2.f32 %v922_v46  ;;  %v1018_v46 = vmul.f32 1.442695, %v895_v51  ;;  %v914_v33 = vmul.f32 1.442695, %v843_v39  ;;  %v742_v13 = vsub.f32 %v2086_v42, %v2311_v11 }
 0x24a   : > { %1819 = vpow2.f32 %v908_v12  ;;  %v2938_v3 = vunpack.c.l.bf16 %v2431_v18  ;;  %v2937_v20 = vunpack.c.h.bf16 %v2431_v18  ;;  %v743_v23 = vsub.f32 %v2088_v43, %v2311_v11 }
 0x24b   : > { %1821 = vpow2.f32 %v910_v30  ;;  %v1022_v30 = vmul.f32 1.442695, %v897_v41  ;;  %v888_v63 = vunpack.c.l.bf16 %v830_v28  ;;  %v889_v42 = vunpack.c.h.bf16 %v830_v28 }
 0x24c   : > { %1823 = vpow2.f32 %v1016_v54  ;;  %v835_v17 = vpack.c.bf16 %v803_v62, %v802_v47  ;;  %v836_v40 = vunpack.c.l.bf16 %v804_v19  ;;  %v837_v39 = vunpack.c.h.bf16 %v804_v19  ;;  %v3008_v62 = vld [vmem:[#allocation7_spill] sm:$0xff] }
 0x24d   : > { %v1814_v5 = vpop.eup %1813  ;;  %1137 = vadd.xlane.f32.xlu2 %v1136_v36  ;;  %1825 = vpow2.f32 %v1018_v46  ;;  %v788_v54 = vsub.f32 %v2147_v6, %v2313_v35  ;;  %v789_v43 = vsub.f32 %v2149_v7, %v2313_v35  ;;  %v1208_v11 = vadd.f32 %v2937_v20, %v2938_v3  ;;  %v3006_v35 = vld [vmem:[#allocation14_spill] sm:$0xff] }
 0x24e   : > { %v1816_v44 = vpop.eup %1815  ;;  %v2433_v27 = vpop.xlane.xlu1 %696  ;;  %1827 = vpow2.f32 %v1020_v0  ;;  %v1004_v36 = vmul.f32 1.442695, %v888_v63  ;;  %v898_v7 = vunpack.c.l.bf16 %v835_v17  ;;  %v3007_v0 = vld [vmem:[#allocation6_spill] sm:$0xff]  ;;  %v902_v63 = vmul.f32 1.442695, %v837_v39 }
 0x24f   : > { %v1818_v38 = vpop.eup %1817  ;;  %v2437_v12 = vpack.c.bf16 %v1816_v44, %v1814_v5  ;;  %1829 = vpow2.f32 %v1022_v30  ;;  %v2463_v5 = vpack.c.bf16 %v743_v23, %v742_v13  ;;  %v2465_v44 = vpop.xlane.xlu2 %699  ;;  %v794_v47 = vsub.f32 %v3007_v0, %v2345_v15  ;;  %v3009_v30 = vld [vmem:[#allocation15_spill] sm:$0xff] }
 0x250   : > { %v1820_v8 = vpop.eup %1819  ;;  %v2447_v50 = vpack.c.bf16 %v1818_v38, %v1812_v45  ;;  %1831 = vpow2.f32 %v912_v16  ;;  %v1006_v16 = vmul.f32 1.442695, %v889_v42  ;;  %v899_v13 = vunpack.c.h.bf16 %v835_v17 }
 0x251   : > { %v1090_v59 = vunpack.c.l.bf16 %v2437_v12  ;;  %v1091_v2 = vunpack.c.h.bf16 %v2437_v12  ;;  %v1822_v32 = vpop.eup %1821  ;;  %1833 = vpow2.f32 %v914_v33  ;;  %v795_v33 = vsub.f32 %v3008_v62, %v2345_v15 }
 0x252   : > { %v2461_v45 = vpack.c.bf16 %v1822_v32, %v1820_v8  ;;  %v1824_v41 = vpop.eup %1823  ;;  %v2948_v19 = vunpack.c.l.bf16 %v2447_v50  ;;  %v2947_v46 = vunpack.c.h.bf16 %v2447_v50  ;;  %v900_v23 = vmul.f32 1.442695, %v836_v40 }
 0x253   : > { %v1169_v51 = vadd.f32 %v1091_v2, %v1090_v59  ;;  %v1826_v38 = vpop.eup %1825  ;;  %v2478_v20 = vpack.c.bf16 %v789_v43, %v788_v54  ;;  %1835 = vpow2.f32 %v1004_v36  ;;  %v1024_v15 = vmul.f32 1.442695, %v898_v7 }
 0x254   : > { %v1828_v32 = vpop.eup %1827  ;;  %v2945_v42 = vunpack.c.l.bf16 %v2461_v45  ;;  %1837 = vpow2.f32 %v1006_v16  ;;  %v1139_v17 = vadd.f32 %v2947_v46, %v2948_v19  ;;  %v2484_v40 = vpack.c.bf16 %v1826_v38, %v1824_v41  ;;  %v3015_v46 = vld [vmem:[#allocation17_spill] sm:$0xff] }
 0x255   : > { %1170 = vadd.xlane.f32.xlu1 %v1169_v51  ;;  %1209 = vadd.xlane.f32.xlu2 %v1208_v11  ;;  %v2944_v51 = vunpack.c.h.bf16 %v2461_v45  ;;  %v1830_v11 = vpop.eup %1829  ;;  %v1026_v62 = vmul.f32 1.442695, %v899_v13  ;;  %1839 = vpow2.f32 %v900_v23  ;;  %v884_v7 = vunpack.c.l.bf16 %v2478_v20 }
 0x256   : > { %v703_v6 = vpop.xlane.xlu1 %702  ;;  %v1832_v3 = vpop.eup %1831  ;;  %v2490_v43 = vpack.c.bf16 %v1830_v11, %v1828_v32  ;;  %1841 = vpow2.f32 %v902_v63  ;;  %v2940_v38 = vunpack.c.h.bf16 %v2484_v40 }
 0x257   : > { %v778_v28 = vsub.f32 %v3006_v35, %v703_v6  ;;  %v779_v8 = vsub.f32 %v3009_v30, %v703_v6  ;;  %v838_v35 = vunpack.c.l.bf16 %v2463_v5  ;;  %v1834_v39 = vpop.eup %1833  ;;  %v831_v6 = vpack.c.bf16 %v795_v33, %v794_v47  ;;  %v2492_v36 = vpop.xlane.xlu2 %705 }
 0x258   : > { %v1130_v54 = vadd.f32 %v2944_v51, %v2945_v42  ;;  %1843 = vpow2.f32 %v1024_v15  ;;  %v2943_v32 = vunpack.c.l.bf16 %v2490_v43  ;;  %v2942_v23 = vunpack.c.h.bf16 %v2490_v43 }
 0x259   : > { %v823_v0 = vpack.c.bf16 %v779_v8, %v778_v28  ;;  %v2941_v28 = vunpack.c.l.bf16 %v2484_v40  ;;  %v1836_v47 = vpop.eup %1835  ;;  %v904_v33 = vmul.f32 1.442695, %v838_v35  ;;  %v890_v13 = vunpack.c.l.bf16 %v831_v6 }
 0x25a   : > { %1845 = vpow2.f32 %v1026_v62  ;;  %v1838_v8 = vpop.eup %1837  ;;  %v2499_v63 = vpack.c.bf16 %v1834_v39, %v1832_v3  ;;  %v996_v15 = vmul.f32 1.442695, %v884_v7  ;;  %v885_v62 = vunpack.c.h.bf16 %v2478_v20  ;;  %v3011_v7 = vld [vmem:[#allocation5_spill] sm:$0xff] }
 0x25b   : > { %v874_v30 = vunpack.c.l.bf16 %v823_v0  ;;  %v875_v49 = vunpack.c.h.bf16 %v823_v0  ;;  %v1840_v11 = vpop.eup %1839  ;;  %v839_v0 = vunpack.c.h.bf16 %v2463_v5  ;;  %v1211_v35 = vadd.f32 %v2940_v38, %v2941_v28  ;;  %v3012_v28 = vld [vmem:[#allocation20_spill] sm:$0xff] }
 0x25c   : > { %v1214_v3 = vadd.f32 %v2942_v23, %v2943_v32  ;;  %v2955_v5 = vunpack.c.l.bf16 %v2499_v63  ;;  %v791_v20 = vsub.f32 %v3011_v7, %v2331_v26  ;;  %v3013_v32 = vld [vmem:[#allocation2_spill] sm:$0xff]  ;;  %v998_v31 = vmul.f32 1.442695, %v885_v62 }
 0x25d   : > { %1140 = vadd.xlane.f32.xlu1 %v1139_v17  ;;  %v976_v16 = vmul.f32 1.442695, %v874_v30  ;;  %v978_v41 = vmul.f32 1.442695, %v875_v49  ;;  %1131 = vadd.xlane.f32.xlu2 %v1130_v54  ;;  %v891_v49 = vunpack.c.h.bf16 %v831_v6  ;;  %v1842_v17 = vpop.eup %1841  ;;  %v1008_v30 = vmul.f32 1.442695, %v890_v13 }
 0x25e   : > { %v2507_v54 = vpack.c.bf16 %v1838_v8, %v1836_v47  ;;  %v3010_v6 = vld [vmem:[#allocation4_spill] sm:$0xff]  ;;  %v2518_v47 = vpop.xlane.xlu1 %708  ;;  %v906_v38 = vmul.f32 1.442695, %v839_v0  ;;  %v781_v19 = vsub.f32 %v3015_v46, %v2492_v36 }
 0x25f   : > { %1847 = vpow2.f32 %v976_v16  ;;  %v1844_v16 = vpop.eup %1843  ;;  %v1010_v13 = vmul.f32 1.442695, %v891_v49  ;;  %v3014_v49 = vld [vmem:[#allocation16_spill] sm:$0xff] }
 0x260   : > { %1849 = vpow2.f32 %v978_v41  ;;  %v1846_v39 = vpop.eup %1845  ;;  %v790_v41 = vsub.f32 %v3010_v6, %v2331_v26  ;;  %v2953_v6 = vunpack.c.l.bf16 %v2507_v54  ;;  %v2952_v26 = vunpack.c.h.bf16 %v2507_v54 }
 0x261   : > { %1851 = vpow2.f32 %v904_v33  ;;  %v2954_v33 = vunpack.c.h.bf16 %v2499_v63  ;;  %v780_v7 = vsub.f32 %v3014_v49, %v2492_v36  ;;  %v2539_v29 = vpack.c.bf16 %v1846_v39, %v1844_v16 }
 0x262   : > { %1853 = vpow2.f32 %v996_v15 }
 0x263   : > { %1855 = vpow2.f32 %v1008_v30 }
 0x264   : > { %1857 = vpow2.f32 %v1010_v13  ;;  %v3016_v13 = vld [vmem:[#allocation12_spill] sm:$0xff] }
 0x265   : > { %1212 = vadd.xlane.f32.xlu1 %v1211_v35  ;;  %v712_v8 = vpop.xlane.xlu2 %711  ;;  %v1848_v35 = vpop.eup %1847  ;;  %1215 = vadd.xlane.f32.xlu2 %v1214_v3  ;;  %v829_v3 = vpack.c.bf16 %v791_v20, %v790_v41  ;;  %1859 = vpow2.f32 %v998_v31  ;;  %v2964_v31 = vunpack.c.l.bf16 %v2539_v29 }
 0x266   : > { %v784_v23 = vsub.f32 %v3012_v28, %v712_v8  ;;  %v785_v51 = vsub.f32 %v3013_v32, %v712_v8  ;;  %v1850_v42 = vpop.eup %1849  ;;  %v1133_v28 = vadd.f32 %v2954_v33, %v2955_v5  ;;  %v2535_v32 = vpack.c.bf16 %v1842_v17, %v1840_v11 }
 0x267   : > { %v2529_v15 = vpack.c.bf16 %v1850_v42, %v1848_v35  ;;  %v1852_v62 = vpop.eup %1851  ;;  %1861 = vpow2.f32 %v906_v38  ;;  %v886_v17 = vunpack.c.l.bf16 %v829_v3  ;;  %v887_v20 = vunpack.c.h.bf16 %v829_v3 }
 0x268   : > { %v826_v0 = vpack.c.bf16 %v785_v51, %v784_v23  ;;  %v1854_v42 = vpop.eup %1853  ;;  %v824_v51 = vpack.c.bf16 %v781_v19, %v780_v7  ;;  %v1202_v23 = vadd.f32 %v2952_v26, %v2953_v6  ;;  %v2963_v19 = vunpack.c.h.bf16 %v2539_v29  ;;  %v3017_v7 = vld [vmem:[#allocation13_spill] sm:$0xff] }
 0x269   : > { %v2951_v8 = vunpack.c.l.bf16 %v2529_v15  ;;  %v2950_v49 = vunpack.c.h.bf16 %v2529_v15  ;;  %v1856_v11 = vpop.eup %1855  ;;  %v2958_v38 = vunpack.c.l.bf16 %v2535_v32  ;;  %v776_v35 = vsub.f32 %v3016_v13, %v2465_v44 }
 0x26a   : > { %v880_v30 = vunpack.c.l.bf16 %v826_v0  ;;  %v881_v46 = vunpack.c.h.bf16 %v826_v0  ;;  %v1858_v41 = vpop.eup %1857  ;;  %v777_v0 = vsub.f32 %v3017_v7, %v2465_v44  ;;  %v2957_v26 = vunpack.c.h.bf16 %v2535_v32 }
 0x26b   : > { %v1181_v36 = vadd.f32 %v2950_v49, %v2951_v8  ;;  %v876_v49 = vunpack.c.l.bf16 %v824_v51  ;;  %v3018_v8 = vld [vmem:[#allocation21_spill] sm:$0xff]  ;;  %v1860_v6 = vpop.eup %1859  ;;  %v1000_v33 = vmul.f32 1.442695, %v886_v17  ;;  %v877_v55 = vunpack.c.h.bf16 %v824_v51 }
 0x26c   : > { %v988_v39 = vmul.f32 1.442695, %v880_v30  ;;  %v1217_v3 = vadd.f32 %v2963_v19, %v2964_v31  ;;  %v2563_v13 = vpack.c.bf16 %v1858_v41, %v1856_v11  ;;  %v1002_v44 = vmul.f32 1.442695, %v887_v20  ;;  %v3020_v20 = vld [vmem:[#allocation18_spill] sm:$0xff] }
 0x26d   : > { %1134 = vadd.xlane.f32.xlu1 %v1133_v28  ;;  %v715_v16 = vpop.xlane.xlu1 %714  ;;  %1182 = vadd.xlane.f32.xlu0 %v1181_v36  ;;  %v990_v28 = vmul.f32 1.442695, %v881_v46  ;;  %v3019_v36 = vld [vmem:[#allocation3_spill] sm:$0xff]  ;;  %v1862_v5 = vpop.eup %1861  ;;  %v822_v46 = vpack.c.bf16 %v777_v0, %v776_v35  ;;  %v1124_v17 = vadd.f32 %v2957_v26, %v2958_v38  ;;  %v2569_v51 = vpack.c.bf16 %v1860_v6, %v1854_v42  ;;  %v3022_v42 = vld [vmem:[#allocation10_spill] sm:$0xff] }
 0x26e   : > { %1203 = vadd.xlane.f32.xlu2 %v1202_v23  ;;  %v786_v30 = vsub.f32 %v3018_v8, %v715_v16  ;;  %v787_v23 = vsub.f32 %v3019_v36, %v715_v16  ;;  %1863 = vpow2.f32 %v988_v39  ;;  %v980_v8 = vmul.f32 1.442695, %v876_v49  ;;  %v3021_v0 = vld [vmem:[#allocation19_spill] sm:$0xff] }
 0x26f   : > { %1865 = vpow2.f32 %v990_v28  ;;  %v2571_v16 = vpack.c.bf16 %v1862_v5, %v1852_v62  ;;  %v982_v39 = vmul.f32 1.442695, %v877_v55  ;;  %v1144_v36 = vpop.xlane.xlu2 %1143  ;;  %v2960_v11 = vunpack.c.l.bf16 %v2563_v13 }
 0x270   : > { %v827_v7 = vpack.c.bf16 %v787_v23, %v786_v30  ;;  %1867 = vpow2.f32 %v1000_v33  ;;  %v2959_v41 = vunpack.c.h.bf16 %v2563_v13  ;;  %v872_v49 = vunpack.c.l.bf16 %v822_v46  ;;  %v3023_v23 = vld [vmem:[#allocation11_spill] sm:$0xff] }
 0x271   : > { %1869 = vpow2.f32 %v1002_v44  ;;  %v782_v35 = vsub.f32 %v3020_v20, %v2518_v47  ;;  %v783_v28 = vsub.f32 %v3021_v0, %v2518_v47  ;;  %v2962_v33 = vunpack.c.l.bf16 %v2569_v51 }
 0x272   : > { %1871 = vpow2.f32 %v980_v8  ;;  %v882_v5 = vunpack.c.l.bf16 %v827_v7  ;;  %v2961_v55 = vunpack.c.h.bf16 %v2569_v51  ;;  %v774_v30 = vsub.f32 %v3022_v42, %v2433_v27 }
 0x273   : > { %v883_v44 = vunpack.c.h.bf16 %v827_v7  ;;  %1873 = vrcp.f32 %v1144_v36  ;;  %v1205_v47 = vadd.f32 %v2959_v41, %v2960_v11  ;;  %v2966_v8 = vunpack.c.l.bf16 %v2571_v16 }
 0x274   : > { %v1864_v6 = vpop.eup %1863  ;;  %1875 = vpow2.f32 %v982_v39  ;;  %v873_v20 = vunpack.c.h.bf16 %v822_v46  ;;  %v972_v0 = vmul.f32 1.442695, %v872_v49  ;;  %v825_v26 = vpack.c.bf16 %v783_v28, %v782_v35  ;;  %v3024_v46 = vld [vmem:[#allocation8_spill] sm:$0xff]  ;;  %v3025_v28 = vld [vmem:[#allocation9_spill] sm:$0xff] }
 0x275   : > { %1218 = vadd.xlane.f32.xlu1 %v1217_v3  ;;  %v1866_v62 = vpop.eup %1865  ;;  %v775_v3 = vsub.f32 %v3023_v23, %v2433_v27  ;;  %v992_v42 = vmul.f32 1.442695, %v882_v5  ;;  %v1196_v27 = vadd.f32 %v2961_v55, %v2962_v33  ;;  %v2965_v7 = vunpack.c.h.bf16 %v2571_v16 }
 0x276   : > { %1125 = vadd.xlane.f32.xlu2 %v1124_v17  ;;  %v1868_v38 = vpop.eup %1867  ;;  %v2595_v39 = vpack.c.bf16 %v1866_v62, %v1864_v6  ;;  %v994_v41 = vmul.f32 1.442695, %v883_v44  ;;  %v772_v49 = vsub.f32 %v3024_v46, %v2425_v61  ;;  %v773_v5 = vsub.f32 %v3025_v28, %v2425_v61  ;;  %v3026_v61 = vld [vmem:[#allocation22_spill] sm:$0xff] }
 0x277   : > { %v1147_v17 = vpop.xlane.xlu1 %1146  ;;  %v1870_v36 = vpop.eup %1869  ;;  %v821_v23 = vpack.c.bf16 %v775_v3, %v774_v30  ;;  %v1127_v6 = vadd.f32 %v2965_v7, %v2966_v8  ;;  %v3030_v19 = vunpack.c.h.bf16 %v3026_v61 }
 0x278   : > { %1877 = vrcp.f32 %v1147_v17  ;;  %v1872_v11 = vpop.eup %1871  ;;  %v974_v17 = vmul.f32 1.442695, %v873_v20  ;;  %v2968_v62 = vunpack.c.l.bf16 %v2595_v39  ;;  %v2967_v30 = vunpack.c.h.bf16 %v2595_v39 }
 0x279   : > { %v1874_v35 = vpop.eup %1873  ;;  %1879 = vpow2.f32 %v972_v0  ;;  %v870_v44 = vunpack.c.l.bf16 %v821_v23  ;;  %v2607_v46 = vpack.c.bf16 %v1870_v36, %v1868_v38  ;;  %v3027_v20 = vunpack.c.l.bf16 %v3026_v61 }
 0x27a   : > { %v1876_v55 = vpop.eup %1875  ;;  %1881 = vpow2.f32 %v992_v42  ;;  %v3028_v42 = vld [vmem:[#allocation23_spill] sm:$0xff]  ;;  %v2619_v31 = vmul.f32 %v1874_v35, %v3030_v19  ;;  %v871_v38 = vunpack.c.h.bf16 %v821_v23  ;;  %v1190_v36 = vadd.f32 %v2967_v30, %v2968_v62 }
 0x27b   : > { %1883 = vpow2.f32 %v994_v41  ;;  %v2611_v0 = vmul.f32 %v1874_v35, %v3027_v20  ;;  %v3029_v28 = vunpack.c.l.bf16 %v3028_v42  ;;  %v3031_v7 = vunpack.c.h.bf16 %v3028_v42 }
 0x27c   : > { %1885 = vpow2.f32 %v974_v17  ;;  %v2629_v20 = vpack.c.bf16 %v1876_v55, %v1872_v11  ;;  %v2982_v23 = vunpack.c.l.bf16 %v2607_v46  ;;  %v2979_v17 = vunpack.c.h.bf16 %v2607_v46 }
 0x27d   : > { %1206 = vadd.xlane.f32.xlu1 %v1205_v47  ;;  %v878_v47 = vunpack.c.l.bf16 %v825_v26 }
 0x27e   : > { %1197 = vadd.xlane.f32.xlu2 %v1196_v27  ;;  %v1878_v3 = vpop.eup %1877  ;;  %v879_v27 = vunpack.c.h.bf16 %v825_v26  ;;  %v820_v26 = vpack.c.bf16 %v773_v5, %v772_v49  ;;  %v968_v5 = vmul.f32 1.442695, %v870_v44  ;;  %v2970_v11 = vunpack.c.l.bf16 %v2629_v20 }
 0x27f   : > { %v2615_v33 = vmul.f32 %v1878_v3, %v3029_v28  ;;  %v2623_v8 = vmul.f32 %v1878_v3, %v3031_v7  ;;  %v984_v41 = vmul.f32 1.442695, %v878_v47  ;;  %v1880_v7 = vpop.eup %1879  ;;  %v2969_v55 = vunpack.c.h.bf16 %v2629_v20 }
 0x280   : > { %v986_v3 = vmul.f32 1.442695, %v879_v27  ;;  %v1882_v49 = vpop.eup %1881  ;;  %v868_v61 = vunpack.c.l.bf16 %v820_v26  ;;  %v869_v28 = vunpack.c.h.bf16 %v820_v26  ;;  %v1199_v44 = vadd.f32 %v2979_v17, %v2982_v23 }
 0x281   : > { %v1322_v19 = vpack.c.bf16 %v2615_v33, %v2611_v0  ;;  %v1884_v47 = vpop.eup %1883  ;;  %1887 = vpow2.f32 %v984_v41 }
 0x282   : > { %v1886_v42 = vpop.eup %1885  ;;  %1889 = vpow2.f32 %v986_v3  ;;  %v2643_v27 = vpack.c.bf16 %v1884_v47, %v1882_v49  ;;  %v966_v26 = vmul.f32 1.442695, %v869_v28 }
 0x283   : > { %1891 = vpow2.f32 %v968_v5  ;;  %v2649_v41 = vpack.c.bf16 %v1886_v42, %v1880_v7 }
 0x284   : > { %v2978_v5 = vunpack.c.l.bf16 %v2643_v27  ;;  %v2975_v30 = vunpack.c.h.bf16 %v2643_v27 }
 0x285   : > { %1128 = vadd.xlane.f32.xlu1 %v1127_v6  ;;  %v970_v6 = vmul.f32 1.442695, %v871_v38  ;;  %v1184_v38 = vadd.f32 %v2969_v55, %v2970_v11  ;;  %v2972_v47 = vunpack.c.l.bf16 %v2649_v41 }
 0x286   : > { %1191 = vadd.xlane.f32.xlu2 %v1190_v36  ;;  %v964_v36 = vmul.f32 1.442695, %v868_v61  ;;  %v1193_v7 = vadd.f32 %v2975_v30, %v2978_v5 }
 0x287   : > { %1893 = vpow2.f32 %v970_v6  ;;  %v1888_v3 = vpop.eup %1887  ;;  %v2971_v6 = vunpack.c.h.bf16 %v2649_v41 }
 0x288   : > { %v1890_v62 = vpop.eup %1889  ;;  %1895 = vpow2.f32 %v964_v36 }
 0x289   : > { %v1892_v49 = vpop.eup %1891  ;;  %1897 = vpow2.f32 %v966_v26  ;;  %v2659_v42 = vpack.c.bf16 %v1890_v62, %v1888_v3  ;;  %v1178_v28 = vadd.f32 %v2971_v6, %v2972_v47  ;;  %v1150_v47 = vpop.xlane.xlu2 %1149 }
 0x28b   : > { %v2973_v26 = vunpack.c.h.bf16 %v2659_v42 }
 0x28d   : > { %1200 = vadd.xlane.f32.xlu1 %v1199_v44  ;;  %v1894_v61 = vpop.eup %1893 }
 0x28e   : > { %1185 = vadd.xlane.f32.xlu2 %v1184_v38  ;;  %v2665_v44 = vpack.c.bf16 %v1894_v61, %v1892_v49  ;;  %v1896_v36 = vpop.eup %1895  ;;  %v2974_v38 = vunpack.c.l.bf16 %v2659_v42 }
 0x28f   : > { %v1898_v55 = vpop.eup %1897 }
 0x290   : > { %v2977_v11 = vunpack.c.l.bf16 %v2665_v44  ;;  %v2976_v62 = vunpack.c.h.bf16 %v2665_v44  ;;  %v1187_v3 = vadd.f32 %v2973_v26, %v2974_v38 }
 0x292   : > { %v1175_v49 = vadd.f32 %v2976_v62, %v2977_v11 }
 0x295   : > { %1194 = vadd.xlane.f32.xlu1 %v1193_v7  ;;  %v2675_v7 = vpack.c.bf16 %v1898_v55, %v1896_v36 }
 0x296   : > { %1179 = vadd.xlane.f32.xlu2 %v1178_v28 }
 0x297   : > { %v2981_v61 = vunpack.c.l.bf16 %v2675_v7  ;;  %v2980_v28 = vunpack.c.h.bf16 %v2675_v7 }
 0x298   : > { %v1153_v55 = vpop.xlane.xlu1 %1152 }
 0x299   : > { %v1172_v6 = vadd.f32 %v2980_v28, %v2981_v61 }
 0x29d   : > { %1188 = vadd.xlane.f32.xlu1 %v1187_v3 }
 0x29e   : > { %1176 = vadd.xlane.f32.xlu2 %v1175_v49 }
 0x2a0   : > { %v1156_v36 = vpop.xlane.xlu2 %1155  ;;  %v1159_v3 = vpop.xlane.xlu1 %1158 }
 0x2a5   : > { %1173 = vadd.xlane.f32.xlu1 %v1172_v6 }
 0x2a8   : > { %v1162_v26 = vpop.xlane.xlu2 %1161 }
 0x2af   : > { %v1165_v38 = vpop.xlane.xlu1 %1164 }
 0x2b8   : > { %v1168_v30 = vpop.xlane.xlu2 %1167 }
 0x2b9   : > { %1899 = vrcp.f32 %v1168_v30 }
 0x2bf   : > { %v1900_v11 = vpop.eup %1899 }
 0x2c0   : > { %v1138_v49 = vpop.xlane.xlu2 %1137  ;;  %v1280_v28 = vmul.f32 %v1900_v11, %v1088_v37  ;;  %v1281_v61 = vmul.f32 %v1900_v11, %v1089_v48 }
 0x2c8   : > { %v1171_v62 = vpop.xlane.xlu1 %1170 }
 0x2c9   : > { %1901 = vrcp.f32 %v1171_v62 }
 0x2ca   : > { %1903 = vrcp.f32 %v1165_v38  ;;  %v2695_v38 = vpop.xlane.xlu2 %1209 }
 0x2cb   : > { %1905 = vrcp.f32 %v1162_v26 }
 0x2cc   : > { %1907 = vrcp.f32 %v1159_v3 }
 0x2cd   : > { %1909 = vrcp.f32 %v1156_v36  ;;  %v3032_v36 = vunpack.c.h.bf16 %v2335_v10  ;;  %v3036_v10 = vpack.c.bf16 %v2623_v8, %v2619_v31 }
 0x2ce   : > { %1911 = vrcp.f32 %v1153_v55 }
 0x2cf   : > { %v1902_v5 = vpop.eup %1901  ;;  %1913 = vrcp.f32 %v1150_v47 }
 0x2d0   : > { %v1141_v17 = vpop.xlane.xlu1 %1140  ;;  %v1282_v6 = vmul.f32 %v1902_v5, %v1090_v59  ;;  %v1283_v30 = vmul.f32 %v1902_v5, %v1091_v2  ;;  %v1904_v35 = vpop.eup %1903 }
 0x2d1   : > { %v1906_v26 = vpop.eup %1905  ;;  %v1278_v37 = vmul.f32 %v1904_v35, %v1086_v52  ;;  %v1279_v14 = vmul.f32 %v1904_v35, %v1087_v34  ;;  %1915 = vrcp.f32 %v1141_v17  ;;  %v3038_v17 = vunpack.c.h.bf16 %v2447_v50 }
 0x2d2   : > { %v1330_v23 = vpack.c.bf16 %v1282_v6, %v1280_v28  ;;  %v1331_v62 = vpack.c.bf16 %v1283_v30, %v1281_v61  ;;  %v1276_v12 = vmul.f32 %v1906_v26, %v1084_v24  ;;  %v1277_v59 = vmul.f32 %v1906_v26, %v1085_v9  ;;  %v1908_v2 = vpop.eup %1907  ;;  %v1132_v61 = vpop.xlane.xlu2 %1131 }
 0x2d3   : > { %v1910_v5 = vpop.eup %1909  ;;  %v1274_v52 = vmul.f32 %v1908_v2, %v1082_v53  ;;  %v1275_v56 = vmul.f32 %v1908_v2, %v1083_v1  ;;  %1917 = vrcp.f32 %v1138_v49  ;;  %v3039_v2 = vunpack.c.l.bf16 %v2413_v58 }
 0x2d4   : > { %1392 = vmatpush.bf16.xpose.msrb.mxu2 %v1330_v23  ;;  %1411 = vmatpush.bf16.xpose.msrb.mxu3 %v1331_v62  ;;  %v1328_v11 = vpack.c.bf16 %v1278_v37, %v1276_v12  ;;  %v1329_v23 = vpack.c.bf16 %v1279_v14, %v1277_v59  ;;  %v1272_v22 = vmul.f32 %v1910_v5, %v1080_v25  ;;  %v1912_v28 = vpop.eup %1911  ;;  %v3037_v12 = vunpack.c.l.bf16 %v2447_v50 }
 0x2d5   : > { %v1273_v24 = vmul.f32 %v1910_v5, %v1081_v57  ;;  %v1914_v55 = vpop.eup %1913  ;;  %v1270_v25 = vmul.f32 %v1912_v28, %v1078_v60  ;;  %v1271_v53 = vmul.f32 %v1912_v28, %v3032_v36  ;;  %v3033_v57 = vld [vmem:[#allocation24_spill] sm:$0xff]  ;;  %v3041_v50 = vunpack.c.l.bf16 %v2499_v63 }
 0x2d6   : > { %v1326_v34 = vpack.c.bf16 %v1274_v52, %v1272_v22  ;;  %v3034_v6 = vunpack.c.l.bf16 %v3033_v57  ;;  %v3035_v1 = vunpack.c.h.bf16 %v3033_v57 }
 0x2d7   : > { %v1327_v35 = vpack.c.bf16 %v1275_v56, %v1273_v24  ;;  %v1916_v60 = vpop.eup %1915 }
 0x2d8   : > { %v2701_v48 = vpop.xlane.xlu1 %1212  ;;  %v1268_v21 = vmul.f32 %v1914_v55, %v3034_v6  ;;  %v1269_v47 = vmul.f32 %v1914_v55, %v3035_v1  ;;  %v1262_v59 = vmul.f32 %v1916_v60, %v3037_v12  ;;  %v1263_v49 = vmul.f32 %v1916_v60, %v3038_v17 }
 0x2d9   : > { %v1918_v14 = vpop.eup %1917 }
 0x2da   : > { %v1216_v3 = vpop.xlane.xlu2 %1215  ;;  %v1324_v30 = vpack.c.bf16 %v1270_v25, %v1268_v21  ;;  %v1325_v62 = vpack.c.bf16 %v1271_v53, %v1269_v47  ;;  %v3048_v21 = vunpack.c.h.bf16 %v2539_v29  ;;  %v3049_v47 = vunpack.c.l.bf16 %v2535_v32 }
 0x2dc   : > { %1393 = vmatpush.bf16.xpose.msrb.mxu2 %v1328_v11  ;;  %1412 = vmatpush.bf16.xpose.msrb.mxu3 %v1329_v23  ;;  %v1260_v11 = vmul.f32 %v1918_v14, %v3039_v2  ;;  %v3040_v23 = vunpack.c.h.bf16 %v2413_v58  ;;  %v3043_v58 = vunpack.c.l.bf16 %v2461_v45  ;;  %v1731_v2 = vld [vmem:[%s2765_s6 + $0x4] sm:$0xf] }
 0x2de   : > { %v1261_v33 = vmul.f32 %v1918_v14, %v3040_v23 }
 0x2e0   : > { %v1135_v9 = vpop.xlane.xlu1 %1134  ;;  %v1321_v5 = vpack.c.bf16 %v1263_v49, %v1261_v33  ;;  %v1732_v49 = vld [vmem:[%s2765_s6 + $0x4] sm:$0xf0] }
 0x2e1   : > { %1919 = vrcp.f32 %v1135_v9  ;;  %v3044_v9 = vunpack.c.h.bf16 %v2461_v45  ;;  %v3047_v45 = vunpack.c.l.bf16 %v2539_v29 }
 0x2e2   : > { %v2723_v37 = vpop.xlane.xlu2 %1203  ;;  %1921 = vrcp.f32 %v1132_v61  ;;  %v3042_v61 = vunpack.c.h.bf16 %v2499_v63  ;;  %v3045_v63 = vunpack.c.l.bf16 %v2571_v16 }
 0x2e4   : > { %1394 = vmatpush.bf16.xpose.msrb.mxu2 %v1326_v34  ;;  %1413 = vmatpush.bf16.xpose.msrb.mxu3 %v1327_v35 }
 0x2e7   : > { %v1920_v31 = vpop.eup %1919 }
 0x2e8   : > { %v1219_v4 = vpop.xlane.xlu1 %1218  ;;  %v1922_v22 = vpop.eup %1921  ;;  %v1258_v52 = vmul.f32 %v1920_v31, %v3041_v50  ;;  %v1259_v24 = vmul.f32 %v1920_v31, %v3042_v61  ;;  %v3055_v50 = vunpack.c.l.bf16 %v2431_v18  ;;  %v3056_v61 = vunpack.c.h.bf16 %v2431_v18  ;;  %v1349_v18 = vld [vmem:[%s2903_s3 + $0x8] sm:$0xff] }
 0x2e9   : > { %v1256_v56 = vmul.f32 %v1922_v22, %v3043_v58  ;;  %v1257_v34 = vmul.f32 %v1922_v22, %v3044_v9  ;;  %v1983_v9 = vmov 0  }
 0x2ea   : > { %v1126_v8 = vpop.xlane.xlu2 %1125  ;;  %1765 = vset.pattern.permute.xlu1 %v1983_v9  ;;  %1764 = vset.pattern.permute.xlu0 %v1983_v9 }
 0x2eb   : > { %v1318_v35 = vpack.c.bf16 %v1258_v52, %v1256_v56  ;;  %v1319_v28 = vpack.c.bf16 %v1259_v24, %v1257_v34  ;;  %v1348_v56 = vld [vmem:[%s2903_s3] sm:$0xff]  ;;  %1359 = vperm.xlu1 %1765, %v1349_v18   ;;  %1766 = vset.pattern.permute.xlu2 %v1983_v9  ;;  %v3072_v9 = vunpack.c.h.bf16 %v2629_v20 }
 0x2ec   : > { %1395 = vmatpush.bf16.xpose.msrb.mxu2 %v1324_v30  ;;  %1414 = vmatpush.bf16.xpose.msrb.mxu3 %v1325_v62  ;;  %v3050_v62 = vunpack.c.h.bf16 %v2535_v32 }
 0x2ed   : > { %1354 = vperm.xlu0 %1764, %v1348_v56  }
 0x2f0   : > { %v1207_v26 = vpop.xlane.xlu1 %1206 }
 0x2f2   : > { %v1198_v23 = vpop.xlane.xlu2 %1197 }
 0x2f4   : > { %1396 = vmatpush.bf16.xpose.msrb.mxu2 %v1322_v19  ;;  %1415 = vmatpush.bf16.xpose.msrb.mxu3 %v3036_v10  ;;  %v1320_v19 = vpack.c.bf16 %v1262_v59, %v1260_v11  ;;  %v1702_v59 = vld [vmem:[%s2765_s6] sm:$0xf]  ;;  %v1704_v11 = vld [vmem:[%s2765_s6 + $0x8] sm:$0xf0] }
 0x2f5   : > { %v2781_v22 = vor.u32 %v1731_v2, %v1704_v11  ;;  %v3065_v11 = vunpack.c.l.bf16 %v2643_v27 }
 0x2f8   : > { %v1129_v0 = vpop.xlane.xlu1 %1128 }
 0x2f9   : > { %1923 = vrcp.f32 %v1129_v0 }
 0x2fa   : > { %1925 = vrcp.f32 %v1219_v4  ;;  %v3046_v4 = vunpack.c.h.bf16 %v2571_v16  ;;  %v3051_v16 = vunpack.c.l.bf16 %v2490_v43  ;;  %v1192_v34 = vpop.xlane.xlu2 %1191 }
 0x2fb   : > { %1927 = vrcp.f32 %v1126_v8  ;;  %v2779_v8 = vor.u32 %v1732_v49, %v1702_v59 }
 0x2fc   : > { %1397 = vmatpush.bf16.xpose.msrb.mxu2 %v1320_v19  ;;  %1416 = vmatpush.bf16.xpose.msrb.mxu3 %v1321_v5  ;;  %1929 = vrcp.f32 %v1216_v3  ;;  %v3054_v5 = vunpack.c.h.bf16 %v2484_v40 }
 0x2fd   : > { %1931 = vrcp.f32 %v2701_v48 }
 0x2fe   : > { %1933 = vrcp.f32 %v2695_v38  ;;  %v3052_v38 = vunpack.c.h.bf16 %v2490_v43  ;;  %v3053_v43 = vunpack.c.l.bf16 %v2484_v40 }
 0x2ff   : > { %v1924_v55 = vpop.eup %1923  ;;  %1935 = vrcp.f32 %v1207_v26 }
 0x300   : > { %v1926_v25 = vpop.eup %1925  ;;  %v1254_v3 = vmul.f32 %v1924_v55, %v3045_v63  ;;  %v1255_v57 = vmul.f32 %v1924_v55, %v3046_v4  ;;  %v1201_v0 = vpop.xlane.xlu1 %1200  ;;  %1937 = vrcp.f32 %v2723_v37  ;;  %v3058_v55 = vunpack.c.h.bf16 %v2563_v13 }
 0x301   : > { %v1928_v36 = vpop.eup %1927  ;;  %v1314_v6 = vmul.f32 %v1926_v25, %v3047_v45  ;;  %v1315_v1 = vmul.f32 %v1926_v25, %v3048_v21  ;;  %1939 = vrcp.f32 %v1201_v0 }
 0x302   : > { %v1930_v53 = vpop.eup %1929  ;;  %v1252_v30 = vmul.f32 %v1928_v36, %v3049_v47  ;;  %v1253_v48 = vmul.f32 %v1928_v36, %v3050_v62  ;;  %1941 = vrcp.f32 %v1198_v23  ;;  %v1733_v47 = vld [vmem:[%s2765_s6 + $0x14] sm:$0xf]  ;;  %v3061_v62 = vunpack.c.l.bf16 %v2607_v46 }
 0x303   : > { %v1312_v29 = vmul.f32 %v1930_v53, %v3051_v16  ;;  %v1313_v60 = vmul.f32 %v1930_v53, %v3052_v38  ;;  %v1932_v17 = vpop.eup %1931  ;;  %v3059_v53 = vunpack.c.l.bf16 %v2507_v54  ;;  %v3062_v16 = vunpack.c.h.bf16 %v2607_v46 }
 0x304   : > { %1398 = vmatpush.bf16.xpose.msrb.mxu2 %v1318_v35  ;;  %1417 = vmatpush.bf16.xpose.msrb.mxu3 %v1319_v28  ;;  %v1316_v10 = vpack.c.bf16 %v1254_v3, %v1252_v30  ;;  %v1317_v14 = vpack.c.bf16 %v1255_v57, %v1253_v48  ;;  %v1934_v33 = vpop.eup %1933  ;;  %v1310_v19 = vmul.f32 %v1932_v17, %v3053_v43  ;;  %v3057_v35 = vunpack.c.l.bf16 %v2563_v13  ;;  %v1712_v30 = vld [vmem:[%s2765_s6 + $0x18] sm:$0xf0] }
 0x305   : > { %v1346_v12 = vpack.c.bf16 %v1314_v6, %v1312_v29  ;;  %v1347_v32 = vpack.c.bf16 %v1315_v1, %v1313_v60  ;;  %v1311_v31 = vmul.f32 %v1932_v17, %v3054_v5  ;;  %v1308_v52 = vmul.f32 %v1934_v33, %v3055_v50  ;;  %v1936_v40 = vpop.eup %1935  ;;  %v1710_v6 = vld [vmem:[%s2765_s6 + $0x10] sm:$0xf]  ;;  %v1734_v1 = vld [vmem:[%s2765_s6 + $0x14] sm:$0xf0]  ;;  %v1186_v60 = vpop.xlane.xlu2 %1185 }
 0x306   : > { %v1309_v24 = vmul.f32 %v1934_v33, %v3056_v61  ;;  %v1938_v37 = vpop.eup %1937  ;;  %v1306_v28 = vmul.f32 %v1936_v40, %v3057_v35  ;;  %v1307_v25 = vmul.f32 %v1936_v40, %v3058_v55  ;;  %v3060_v3 = vunpack.c.h.bf16 %v2507_v54 }
 0x307   : > { %v1344_v26 = vpack.c.bf16 %v1310_v19, %v1308_v52  ;;  %v1304_v63 = vmul.f32 %v1938_v37, %v3059_v53  ;;  %v1940_v21 = vpop.eup %1939  ;;  %v2812_v38 = vor.u32 %v1734_v1, %v1710_v6  ;;  %v2814_v54 = vor.u32 %v1733_v47, %v1712_v30  ;;  %v1350_v47 = vld [vmem:[%s2903_s3 + $0x10] sm:$0xff] }
 0x308   : > { %v1345_v58 = vpack.c.bf16 %v1311_v31, %v1309_v24  ;;  %v1195_v36 = vpop.xlane.xlu1 %1194  ;;  %v1305_v4 = vmul.f32 %v1938_v37, %v3060_v3  ;;  %v1942_v13 = vpop.eup %1941  ;;  %v1302_v48 = vmul.f32 %v1940_v21, %v3061_v62  ;;  %v1303_v29 = vmul.f32 %v1940_v21, %v3062_v16  ;;  %1364 = vperm.xlu2 %1766, %v1350_v47  }
 0x309   : > { %v1342_v57 = vpack.c.bf16 %v1306_v28, %v1304_v63  ;;  %1943 = vrcp.f32 %v1195_v36  ;;  %v3066_v33 = vunpack.c.h.bf16 %v2643_v27  ;;  %v3068_v19 = vunpack.c.h.bf16 %v2595_v39  ;;  %v1183_v24 = vpop.xlane.xlu0 %1182 }
 0x30a   : > { %v1343_v45 = vpack.c.bf16 %v1307_v25, %v1305_v4  ;;  %1945 = vrcp.f32 %v1192_v34  ;;  %v3070_v40 = vunpack.c.h.bf16 %v2659_v42  ;;  %v3071_v37 = vunpack.c.l.bf16 %v2629_v20 }
 0x30b   : > { %v3073_v53 = vunpack.c.l.bf16 %v2649_v41  ;;  %v3074_v63 = vunpack.c.h.bf16 %v2649_v41  ;;  %v3075_v4 = vunpack.c.l.bf16 %v2529_v15  ;;  %v3077_v41 = vunpack.c.l.bf16 %v2675_v7 }
 0x30c   : > { %1399 = vmatpush.bf16.xpose.msrb.mxu2 %v1316_v10  ;;  %1418 = vmatpush.bf16.xpose.msrb.mxu3 %v1317_v14  ;;  %v3063_v10 = vunpack.c.l.bf16 %v2569_v51  ;;  %v3078_v62 = vunpack.c.h.bf16 %v2675_v7 }
 0x30d   : > { %v1180_v31 = vpop.xlane.xlu2 %1179 }
 0x30e   : > { %v1300_v14 = vmul.f32 %v1942_v13, %v3063_v10 }
 0x30f   : > { %v1944_v46 = vpop.eup %1943 }
 0x310   : > { %v1189_v59 = vpop.xlane.xlu1 %1188  ;;  %v1340_v17 = vpack.c.bf16 %v1302_v48, %v1300_v14  ;;  %v1946_v2 = vpop.eup %1945  ;;  %v1298_v23 = vmul.f32 %v1944_v46, %v3065_v11  ;;  %v1299_v0 = vmul.f32 %v1944_v46, %v3066_v33 }
 0x311   : > { %1947 = vrcp.f32 %v1189_v59  ;;  %v1297_v5 = vmul.f32 %v1946_v2, %v3068_v19  ;;  %v1472_v19 = vld [vmem:[%s2868_s22 + $0x20] sm:$0xff] }
 0x312   : > { %1949 = vrcp.f32 %v1186_v60 }
 0x313   : > { %1400 = vmatmul.bf16.vlgmr.msrb.gmra.mxu2 %v2779_v8  ;;  %1419 = vmatmul.bf16.vlgmr.msrb.gmra.mxu3 %v2781_v22  ;;  %v1339_v52 = vpack.c.bf16 %v1299_v0, %v1297_v5  ;;  %1951 = vrcp.f32 %v1180_v31 }
 0x314   : > { %1430 = vmatpush.bf16.xpose.msra.mxu2 %v1346_v12  ;;  %1449 = vmatpush.bf16.xpose.msra.mxu3 %v1347_v32  ;;  %v3064_v12 = vunpack.c.h.bf16 %v2569_v51  ;;  %v3067_v51 = vunpack.c.l.bf16 %v2595_v39  ;;  %1953 = vrcp.f32 %v1183_v24 }
 0x315   : > { %v1177_v25 = vpop.xlane.xlu2 %1176 }
 0x316   : > { %v1301_v32 = vmul.f32 %v1942_v13, %v3064_v12  ;;  %v1296_v43 = vmul.f32 %v1946_v2, %v3067_v51  ;;  %v1351_v12 = vld [vmem:[%s2903_s3 + $0x18] sm:$0xff]  ;;  %v1470_v2 = vld [vmem:[%s2868_s22 + $0x10] sm:$0xff] }
 0x317   : > { %v1948_v61 = vpop.eup %1947  ;;  %1369 = vperm.xlu2 %1766, %v1351_v12  }
 0x318   : > { %v1341_v49 = vpack.c.bf16 %v1303_v29, %v1301_v32  ;;  %v1338_v50 = vpack.c.bf16 %v1298_v23, %v1296_v43  ;;  %v1295_v56 = vmul.f32 %v1948_v61, %v3070_v40  ;;  %v1174_v34 = vpop.xlane.xlu1 %1173  ;;  %v3080_v29 = vunpack.c.h.bf16 %v2665_v44 }
 0x319   : > { %1955 = vrcp.f32 %v1174_v34 }
 0x31a   : > { %1957 = vrcp.f32 %v1177_v25 }
 0x31c   : > { %1431 = vmatpush.bf16.xpose.msra.mxu2 %v1344_v26  ;;  %1450 = vmatpush.bf16.xpose.msra.mxu3 %v1345_v58  ;;  %v1950_v26 = vpop.eup %1949  ;;  %v3069_v58 = vunpack.c.l.bf16 %v2659_v42 }
 0x31d   : > { %v1292_v39 = vmul.f32 %v1950_v26, %v3071_v37  ;;  %v1293_v18 = vmul.f32 %v1950_v26, %v3072_v9  ;;  %v1952_v55 = vpop.eup %1951  ;;  %v1474_v26 = vld [vmem:[%s2868_s22 + $0x30] sm:$0xff] }
 0x31e   : > { %v1294_v27 = vmul.f32 %v1948_v61, %v3069_v58  ;;  %v1954_v36 = vpop.eup %1953  ;;  %v1288_v42 = vmul.f32 %v1952_v55, %v3073_v53  ;;  %v1289_v3 = vmul.f32 %v1952_v55, %v3074_v63  ;;  %v1471_v55 = vld [vmem:[%s2868_s22 + $0x18] sm:$0xff] }
 0x31f   : > { %v1337_v28 = vpack.c.bf16 %v1295_v56, %v1293_v18  ;;  %v1290_v20 = vmul.f32 %v1954_v36, %v3075_v4  ;;  %v1956_v1 = vpop.eup %1955 }
 0x320   : > { %v1336_v35 = vpack.c.bf16 %v1294_v27, %v1292_v39  ;;  %v1958_v30 = vpop.eup %1957  ;;  %v1284_v13 = vmul.f32 %v1956_v1, %v3077_v41  ;;  %v1285_v48 = vmul.f32 %v1956_v1, %v3078_v62  ;;  %v1469_v39 = vld [vmem:[%s2868_s22 + $0x8] sm:$0xff] }
 0x321   : > { %v1334_v6 = vpack.c.bf16 %v1290_v20, %v1288_v42  ;;  %v1287_v60 = vmul.f32 %v1958_v30, %v3080_v29 }
 0x323   : > { %1405 = vmatmul.bf16.gmra.mxu2 %v2812_v38  ;;  %1424 = vmatmul.bf16.gmra.mxu3 %v2814_v54  ;;  %v1333_v14 = vpack.c.bf16 %v1287_v60, %v1285_v48 }
 0x324   : > { %1432 = vmatpush.bf16.xpose.msra.mxu2 %v1342_v57  ;;  %1451 = vmatpush.bf16.xpose.msra.mxu3 %v1343_v45  ;;  %v3076_v57 = vunpack.c.h.bf16 %v2529_v15  ;;  %v3079_v15 = vunpack.c.l.bf16 %v2665_v44 }
 0x326   : > { %v1291_v45 = vmul.f32 %v1954_v36, %v3076_v57  ;;  %v1286_v16 = vmul.f32 %v1958_v30, %v3079_v15 }
 0x328   : > { %v1335_v21 = vpack.c.bf16 %v1291_v45, %v1289_v3  ;;  %v1332_v10 = vpack.c.bf16 %v1286_v16, %v1284_v13  ;;  %v1473_v3 = vld [vmem:[%s2868_s22 + $0x28] sm:$0xff] }
 0x32c   : > { %1433 = vmatpush.bf16.xpose.msra.mxu2 %v1340_v17  ;;  %1452 = vmatpush.bf16.xpose.msra.mxu3 %v1341_v49  ;;  %v1468_v17 = vld [vmem:[%s2868_s22] sm:$0xff] }
 0x334   : > { %1434 = vmatpush.bf16.xpose.msra.mxu2 %v1338_v50  ;;  %1453 = vmatpush.bf16.xpose.msra.mxu3 %v1339_v52 }
 0x33c   : > { %1435 = vmatpush.bf16.xpose.msra.mxu2 %v1336_v35  ;;  %1454 = vmatpush.bf16.xpose.msra.mxu3 %v1337_v28 }
 0x344   : > { %1436 = vmatpush.bf16.xpose.msra.mxu2 %v1334_v6  ;;  %1455 = vmatpush.bf16.xpose.msra.mxu3 %v1335_v21  ;;  %v1475_v21 = vld [vmem:[%s2868_s22 + $0x38] sm:$0xff] }
 0x34c   : > { %1437 = vmatpush.bf16.xpose.msra.mxu2 %v1332_v10  ;;  %1456 = vmatpush.bf16.xpose.msra.mxu3 %v1333_v14 }
 0x353   : > { %1438 = vmatmul.bf16.vlgmr.msra.gmra.mxu2 %v2779_v8  ;;  %1457 = vmatmul.bf16.vlgmr.msra.gmra.mxu3 %v2781_v22 }
 0x35f   : > { %v1355_v44 = vpop.permute.xlu0 %1354 }
 0x362   : > { %v1365_v23 = vpop.permute.xlu2 %1364 }
 0x363   : > { %1443 = vmatmul.bf16.gmra.mxu2 %v2812_v38  ;;  %1462 = vmatmul.bf16.gmra.mxu3 %v2814_v54  ;;  %v1360_v38 = vpop.permute.xlu1 %1359 }
 0x371   : > { %v1370_v50 = vpop.permute.xlu2 %1369 }
 0x396   : > { %v1401_v7 = vpop.f32.mrf.mxu2  ;;  %v1420_v32 = vpop.f32.mrf.mxu3 }
 0x397   : > { %v1402_v59 = vadd.f32 %v1401_v7, %v1355_v44 }
 0x399   : > { %v1421_v8 = vadd.f32 %v1420_v32, %v1402_v59 }
 0x39b   : > { %v1476_v22 = vadd.f32 %v1468_v17, %v1421_v8 }
 0x39d   : > { %1484 = vst [vmem:[%s2874_s25] sm:$0xff] %v1476_v22 }
 0x39e   : > { %v1403_v54 = vpop.f32.mrf.mxu2  ;;  %v1422_v49 = vpop.f32.mrf.mxu3 }
 0x39f   : > { %v1404_v46 = vadd.f32 %v1403_v54, %v1360_v38 }
 0x3a1   : > { %v1423_v11 = vadd.f32 %v1422_v49, %v1404_v46 }
 0x3a3   : > { %v1478_v33 = vadd.f32 %v1470_v2, %v1423_v11 }
 0x3a5   : > { %1486 = vst [vmem:[%s2874_s25 + $0x10] sm:$0xff] %v1478_v33 }
 0x3a6   : > { %v1406_v0 = vpop.f32.mrf.mxu2  ;;  %v1425_v51 = vpop.f32.mrf.mxu3 }
 0x3a7   : > { %v1407_v43 = vadd.f32 %v1406_v0, %v1365_v23 }
 0x3a9   : > { %v1426_v5 = vadd.f32 %v1425_v51, %v1407_v43 }
 0x3ab   : > { %v1480_v31 = vadd.f32 %v1472_v19, %v1426_v5 }
 0x3ad   : > { %1488 = vst [vmem:[%s2874_s25 + $0x20] sm:$0xff] %v1480_v31 }
 0x3ae   : > { %v1408_v52 = vpop.f32.mrf.mxu2  ;;  %v1427_v61 = vpop.f32.mrf.mxu3 }
 0x3af   : > { %v1409_v24 = vadd.f32 %v1408_v52, %v1370_v50 }
 0x3b1   : > { %v1428_v58 = vadd.f32 %v1427_v61, %v1409_v24 }
 0x3b3   : > { %v1482_v27 = vadd.f32 %v1474_v26, %v1428_v58 }
 0x3b5   : > { %1490 = vst [vmem:[%s2874_s25 + $0x30] sm:$0xff] %v1482_v27 }
 0x3d6   : > { %v1439_v40 = vpop.f32.mrf.mxu2  ;;  %v1458_v56 = vpop.f32.mrf.mxu3 }
 0x3d7   : > { %v1440_v37 = vadd.f32 %v1439_v40, %v1355_v44 }
 0x3d9   : > { %v1459_v9 = vadd.f32 %v1458_v56, %v1440_v37 }
 0x3db   : > { %v1477_v18 = vadd.f32 %v1469_v39, %v1459_v9 }
 0x3dd   : > { %1485 = vst [vmem:[%s2874_s25 + $0x8] sm:$0xff] %v1477_v18 }
 0x3de   : > { %v1441_v34 = vpop.f32.mrf.mxu2  ;;  %v1460_v35 = vpop.f32.mrf.mxu3 }
 0x3df   : > { %v1442_v28 = vadd.f32 %v1441_v34, %v1360_v38 }
 0x3e1   : > { %v1461_v25 = vadd.f32 %v1460_v35, %v1442_v28 }
 0x3e3   : > { %v1479_v36 = vadd.f32 %v1471_v55, %v1461_v25 }
 0x3e5   : > { %1487 = vst [vmem:[%s2874_s25 + $0x18] sm:$0xff] %v1479_v36 }
 0x3e6   : > { %v1444_v53 = vpop.f32.mrf.mxu2  ;;  %v1463_v42 = vpop.f32.mrf.mxu3 }
 0x3e7   : > { %v1445_v63 = vadd.f32 %v1444_v53, %v1365_v23 }
 0x3e9   : > { %v1464_v4 = vadd.f32 %v1463_v42, %v1445_v63 }
 0x3eb   : > { %v1481_v20 = vadd.f32 %v1473_v3, %v1464_v4 }
 0x3ed   : > { %1489 = vst [vmem:[%s2874_s25 + $0x28] sm:$0xff] %v1481_v20 }
 0x3ee   : > { %v1446_v57 = vpop.f32.mrf.mxu2  ;;  %v1465_v6 = vpop.f32.mrf.mxu3 }
 0x3ef   : > { %v1447_v45 = vadd.f32 %v1446_v57, %v1370_v50 }
 0x3f1   : > { %v1466_v1 = vadd.f32 %v1465_v6, %v1447_v45 }
 0x3f3   : > { %v1483_v47 = vadd.f32 %v1475_v21, %v1466_v1 }
 0x3f5   : > { %1491 = vst [vmem:[%s2874_s25 + $0x38] sm:$0xff] %v1483_v47 }
 0x3f6 PF: > { %s15_s20 = sadd.s32 1, %s1981_s20   ;;  %s3081_s18 = smov %s1977_s19 }
 0x3f7   : > { %p12_p5 = scmp.ge.s32.totalorder %s15_s20, 4   ;;  %s3082_s19 = smov %s3084_s21 }
 0x3f9   :  { %14 = sbr.rel (!%p12_p5) target bundleno = 2 (0x2), region = 79 }

</bundles_post_ra>
